<compile_context>
chip_gen: v7x
topology: tpu7x:2x2x1
jax: 0.10.0
libtpu: 0.0.40
codegen_flags: <defaults>
</compile_context>

<pallas_src>
import functools

import jax
import jax.numpy as jnp
from jax.experimental import pallas as pl
from jax.experimental.pallas import tpu as pltpu

D_FFN = 2048
LN_EPS = 1e-5          # torch nn.LayerNorm default
LANE = 128
SUBLANE = 8
_MIB = 1024 * 1024


def _round_up(x, m):
    return (x + m - 1) // m * m


# ---------------------------------------------------------------------------
# Kernel
# ---------------------------------------------------------------------------
def ffn_kernel(x_ref, w1_ref, w2_ref, gamma_ref, beta_ref, o_ref,
               acc_ref, xb_ref, *, inv_d):
    """One (row-tile, D_FFN-chunk) grid step of
         y = x + relu(x @ W1) @ W2 ; out = LayerNorm(y) * gamma + beta.
    acc_ref carries the f32 residual + partial-FFN sum across the k (D_FFN) axis.
    """
    k = pl.program_id(1)

    @pl.when(k == 0)
    def _init():
        xf = x_ref[...]                         # (tm, d_pad) f32, DMA'd once per row tile
        acc_ref[...] = xf                       # residual, exact f32
        xb_ref[...] = xf.astype(jnp.bfloat16)   # MXU operand, cast once per row tile

    # Linear 1 chunk (no bias) + ReLU: bf16 MXU operands, f32 accumulation,
    # then bf16 immediately so the (tm, tk) intermediate is half-width.
    h = jnp.dot(xb_ref[...], w1_ref[...], preferred_element_type=jnp.float32)
    h = jnp.maximum(h, 0.0).astype(jnp.bfloat16)

    # Linear 2 chunk (no bias), accumulated in f32 on top of the residual.
    acc_ref[...] += jnp.dot(h, w2_ref[...], preferred_element_type=jnp.float32)

    @pl.when(k == pl.num_programs(1) - 1)
    def _finalize():
        y = acc_ref[...]                                    # (tm, d_pad) f32
        # Padded lanes of y are exactly zero (x, W2 columns, gamma, beta zero-padded),
        # so single-pass sums over all lanes equal sums over the true d_model lanes.
        s1 = jnp.sum(y, axis=-1, keepdims=True)
        s2 = jnp.sum(y * y, axis=-1, keepdims=True)
        mean = s1 * inv_d
        var = jnp.maximum(s2 * inv_d - mean * mean, 0.0)    # guard tiny cancellation
        norm = (y - mean) * jax.lax.rsqrt(var + LN_EPS)
        o_ref[...] = (norm * gamma_ref[...] + beta_ref[...]).astype(o_ref.dtype)


# ---------------------------------------------------------------------------
# VMEM planning
# ---------------------------------------------------------------------------
def _vmem_capacity_bytes():
    try:
        return int(pltpu.get_tpu_info().vmem_capacity_bytes)
    except Exception:
        return 64 * _MIB            # assume the smallest (v7x) when unknown


def _single_buffered_spec(block_shape, index_map):
    """Grid-invariant block: request 1 pipeline buffer. Returns (spec, n_buffers)."""
    try:
        return pl.BlockSpec(block_shape, index_map, pipeline_mode=pl.Buffered(1)), 1
    except (TypeError, AttributeError):
        return pl.BlockSpec(block_shape, index_map), 2


def _plan_tiling(n_rows, d_pad):
    """Budget-aware choice of (tile_rows, k_chunk).

    Footprint model (bytes):
      weights : n_w_bufs * 2 * d_pad * k_chunk * 2      (W1 chunk + W2 chunk, bf16)
      per row : 8*d_pad (x, 2 bufs f32) + 8*d_pad (out, 2 bufs f32) + 4*d_pad (f32 acc)
                + 2*d_pad (bf16 x) + 6*k_chunk (f32 h + bf16 h temporaries)
    """
    phys = _vmem_capacity_bytes()
    budget = phys - 8 * _MIB                      # Mosaic-internal headroom

    # Full weight residency (single-buffered, loaded once) if it fits in half the
    # budget; otherwise stream double-buffered D_FFN chunks.
    resident_bytes = 2 * d_pad * D_FFN * 2
    if resident_bytes <= budget // 2:
        k_chunk = D_FFN
        w_bytes = resident_bytes
    else:
        k_chunk = D_FFN
        while k_chunk > LANE and 2 * (2 * d_pad * k_chunk * 2) > budget // 2:
            k_chunk //= 2
        w_bytes = 2 * (2 * d_pad * k_chunk * 2)

    per_row = 22 * d_pad + 6 * k_chunk
    rows_budget = max(budget - w_bytes, per_row * SUBLANE)
    tile_rows = max((rows_budget // per_row) // SUBLANE * SUBLANE, SUBLANE)
    tile_rows = min(tile_rows, 1024)              # diminishing returns past this

    # Never exceed the actual row count, and keep >=2 row tiles when possible so the
    # "parallel" row axis can shard across both TensorCores on v7x.
    tile_rows = min(tile_rows, _round_up(n_rows, SUBLANE))
    if n_rows > SUBLANE:
        tile_rows = min(tile_rows, _round_up(pl.cdiv(n_rows, 2), SUBLANE))

    return tile_rows, k_chunk


# ---------------------------------------------------------------------------
# Host-side wrappers
# ---------------------------------------------------------------------------
def prepare_ffn_params(w1, w2, gamma, beta):
    """Pad to lane-dense d_pad and cast matmul weights to bf16. Call once, reuse."""
    d_model = w1.shape[0]
    d_pad = _round_up(d_model, LANE)
    pad = d_pad - d_model
    w1p = jnp.pad(w1, ((0, pad), (0, 0))).astype(jnp.bfloat16)       # [d_pad, D_FFN]
    w2p = jnp.pad(w2, ((0, 0), (0, pad))).astype(jnp.bfloat16)       # [D_FFN, d_pad]
    gamma2d = jnp.pad(gamma, (0, pad)).reshape(1, d_pad).astype(jnp.float32)
    beta2d = jnp.pad(beta, (0, pad)).reshape(1, d_pad).astype(jnp.float32)
    return w1p, w2p, gamma2d, beta2d


def feed_forward_net(x, w1p, w2p, gamma2d, beta2d, *, tile_rows=None, k_chunk=None):
    """x: [batch, seq, d_model] float32; weights from prepare_ffn_params().
    Returns LayerNorm(x + relu(x @ W1) @ W2), same shape/dtype as x."""
    batch, seq, d_model = x.shape
    d_pad = w1p.shape[0]
    assert w1p.shape == (d_pad, D_FFN) and w2p.shape == (D_FFN, d_pad)
    assert d_pad == _round_up(d_model, LANE)

    n = batch * seq
    plan_rows, plan_k = _plan_tiling(n, d_pad)
    if tile_rows is None:
        tile_rows = plan_rows
    tile_rows = max(_round_up(tile_rows, SUBLANE), SUBLANE)
    if k_chunk is None:
        k_chunk = plan_k
    assert D_FFN % k_chunk == 0 and k_chunk % LANE == 0
    weights_resident = (k_chunk == D_FFN)       # constant index_map -> loaded once

    n_pad = _round_up(n, tile_rows)
    grid = (n_pad // tile_rows, D_FFN // k_chunk)

    # Per-call padding of the activations only (weights were prepared once, outside).
    x2d = jnp.pad(x.reshape(n, d_model), ((0, n_pad - n), (0, d_pad - d_model)))

    # Single-buffer anything whose index_map is grid-invariant.
    if weights_resident:
        w1_spec, w1_bufs = _single_buffered_spec((d_pad, k_chunk), lambda i, k: (0, k))
        w2_spec, w2_bufs = _single_buffered_spec((k_chunk, d_pad), lambda i, k: (k, 0))
    else:
        w1_spec, w1_bufs = pl.BlockSpec((d_pad, k_chunk), lambda i, k: (0, k)), 2
        w2_spec, w2_bufs = pl.BlockSpec((k_chunk, d_pad), lambda i, k: (k, 0)), 2
    gamma_spec, gb_bufs = _single_buffered_spec((1, d_pad), lambda i, k: (0, 0))
    beta_spec, _ = _single_buffered_spec((1, d_pad), lambda i, k: (0, 0))

    # Scoped-VMEM limit from the footprint actually allocated (+ headroom); the default
    # scope (16 MiB v5e / 32 MiB v6e,v7x) is too small for resident weights + big tiles.
    w_bytes = (w1_bufs + w2_bufs) * d_pad * k_chunk * 2
    row_bytes = tile_rows * (22 * d_pad + 6 * k_chunk)
    gb_bytes = 2 * gb_bufs * d_pad * 4
    vmem_limit = w_bytes + row_bytes + gb_bytes + 4 * _MIB
    vmem_limit = max(vmem_limit, 32 * _MIB)
    vmem_limit = min(vmem_limit, _vmem_capacity_bytes(), 128 * _MIB)

    # Advisory cost estimate with true (unpadded) shapes.
    flops = 2 * 2 * n * d_model * D_FFN
    w_hbm_reads = 1 if weights_resident else grid[0]
    bytes_accessed = (n_pad * d_pad * 4 * 2                    # x in + out
                      + w_hbm_reads * 2 * d_pad * D_FFN * 2    # W1 + W2 (bf16)
                      + 2 * d_pad * 4)                         # gamma + beta

    out = pl.pallas_call(
        functools.partial(ffn_kernel, inv_d=1.0 / d_model),
        out_shape=jax.ShapeDtypeStruct((n_pad, d_pad), x.dtype),
        grid_spec=pltpu.PrefetchScalarGridSpec(
            num_scalar_prefetch=0,
            grid=grid,
            in_specs=[
                pl.BlockSpec((tile_rows, d_pad), lambda i, k: (i, 0)),   # x row tile (f32)
                w1_spec,                                                  # W1 chunk (bf16)
                w2_spec,                                                  # W2 chunk (bf16)
                gamma_spec,                                               # gamma (f32)
                beta_spec,                                                # beta  (f32)
            ],
            out_specs=pl.BlockSpec((tile_rows, d_pad), lambda i, k: (i, 0)),
            scratch_shapes=[
                pltpu.VMEM((tile_rows, d_pad), jnp.float32),     # residual + accumulator
                pltpu.VMEM((tile_rows, d_pad), jnp.bfloat16),    # bf16 x for the MXU
            ],
        ),
        compiler_params=pltpu.CompilerParams(
            dimension_semantics=("parallel", "arbitrary"),
            vmem_limit_bytes=int(vmem_limit),
        ),
        cost_estimate=pl.CostEstimate(
            flops=flops, transcendentals=n, bytes_accessed=int(bytes_accessed)),
    )(x2d, w1p, w2p, gamma2d, beta2d)

    return out[:n, :d_model].reshape(batch, seq, d_model)


def reference(x, w1, w2, gamma, beta):
    # Pure-JAX reference matching the torch module semantics with the same precision
    # recipe (bf16 MXU operands, f32 accumulation, f32 residual + LayerNorm).
    b, s, d = x.shape
    x2 = x.reshape(b * s, d)
    h = jnp.maximum(jnp.dot(x2.astype(jnp.bfloat16), w1.astype(jnp.bfloat16),
                            preferred_element_type=jnp.float32), 0.0)
    y = jnp.dot(h.astype(jnp.bfloat16), w2.astype(jnp.bfloat16),
                preferred_element_type=jnp.float32) + x2
    mean = jnp.mean(y, axis=-1, keepdims=True)
    var = jnp.mean((y - mean) ** 2, axis=-1, keepdims=True)
    out = (y - mean) * jax.lax.rsqrt(var + LN_EPS) * gamma + beta
    return out.reshape(b, s, d)


if __name__ == "__main__":
    key = jax.random.PRNGKey(0)
    batch, seq, d_model = 2, 8, 32

    k_x, k_w1, k_w2 = jax.random.split(key, 3)
    x = jax.random.normal(k_x, (batch, seq, d_model), dtype=jnp.float32)

    # Deterministic synthetic parameters (shapes from the module's __init__).
    # torch Linear.weight is [out, in]; we store the transposed [in, out] layout.
    w1 = jax.random.normal(k_w1, (d_model, D_FFN), dtype=jnp.float32) * (1.0 / d_model ** 0.5)
    w2 = jax.random.normal(k_w2, (D_FFN, d_model), dtype=jnp.float32) * (1.0 / D_FFN ** 0.5)
    gamma = jnp.ones((d_model,), dtype=jnp.float32)   # torch LayerNorm default weight
    beta = jnp.zeros((d_model,), dtype=jnp.float32)   # torch LayerNorm default bias

    # Pad + bf16-cast parameters once (hoisted out of the per-call path).
    params = prepare_ffn_params(w1, w2, gamma, beta)
    ref = reference(x, w1, w2, gamma, beta)

    # Default (budget-planned, resident-weight) path.
    out = jax.block_until_ready(feed_forward_net(x, *params))
    assert out.shape == (batch, seq, d_model)
    assert out.dtype == x.dtype
    assert bool(jnp.all(jnp.isfinite(out)))
    assert jnp.allclose(out, ref, atol=2e-3, rtol=2e-3), "mismatch vs reference (resident path)"

    # Also exercise the D_FFN-chunked accumulation path (used on small-VMEM parts / large d_model).
    out_chunked = jax.block_until_ready(
        feed_forward_net(x, *params, tile_rows=8, k_chunk=512))
    assert jnp.allclose(out_chunked, ref, atol=2e-3, rtol=2e-3), "mismatch vs reference (chunked path)"

    print("KERNEL_OK")
</pallas_src>

<mosaic_0001>
module attributes {stable_mosaic.version = 11 : i64} {
  func.func @ffn_kernel(%arg0: i32, %arg1: i32, %arg2: memref<8x128xf32, #tpu.memory_space<vmem>>, %arg3: memref<128x2048xbf16, #tpu.memory_space<vmem>>, %arg4: memref<2048x128xbf16, #tpu.memory_space<vmem>>, %arg5: memref<1x128xf32, #tpu.memory_space<vmem>>, %arg6: memref<1x128xf32, #tpu.memory_space<vmem>>, %arg7: memref<8x128xf32, #tpu.memory_space<vmem>>, %arg8: memref<8x128xf32, #tpu.memory_space<vmem>>, %arg9: memref<8x128xbf16, #tpu.memory_space<vmem>>) attributes {dimension_semantics = [#tpu.dimension_semantics<parallel>, #tpu.dimension_semantics<arbitrary>], iteration_bounds = array<i64: 2, 1>, scalar_prefetch = 0 : i64, scratch_operands = 2 : i64, tpu.core_type = #tpu.core_type<tc>, window_params = [{transform_indices = @transform_0, window_bounds = array<i64: 8, 128>}, {pipeline_mode = #tpu.pipeline_mode<synchronous>, transform_indices = @transform_1, window_bounds = array<i64: 128, 2048>}, {pipeline_mode = #tpu.pipeline_mode<synchronous>, transform_indices = @transform_2, window_bounds = array<i64: 2048, 128>}, {pipeline_mode = #tpu.pipeline_mode<synchronous>, transform_indices = @transform_3, window_bounds = array<i64: 1, 128>}, {pipeline_mode = #tpu.pipeline_mode<synchronous>, transform_indices = @transform_4, window_bounds = array<i64: 1, 128>}, {transform_indices = @transform_5, window_bounds = array<i64: 8, 128>}]} {
    %c0_i32 = arith.constant 0 : i32
    %0 = arith.cmpi eq, %arg1, %c0_i32 : i32
    %1 = arith.extui %0 : i1 to i32
    %c0_i32_0 = arith.constant 0 : i32
    %2 = arith.cmpi ne, %1, %c0_i32_0 : i32
    scf.if %2 {
      %c0_14 = arith.constant 0 : index
      %c0_15 = arith.constant 0 : index
      %17 = vector.load %arg2[%c0_14, %c0_15] : memref<8x128xf32, #tpu.memory_space<vmem>>, vector<8x128xf32>
      %c0_16 = arith.constant 0 : index
      %c0_17 = arith.constant 0 : index
      %18 = vector.load %arg8[%c0_16, %c0_17] : memref<8x128xf32, #tpu.memory_space<vmem>>, vector<8x128xf32>
      tpu.vector_store %arg8[%c0_16, %c0_17], %17 {strides = array<i32>} : memref<8x128xf32, #tpu.memory_space<vmem>>, vector<8x128xf32>,
      %19 = arith.truncf %17 : vector<8x128xf32> to vector<8x128xbf16>
      %c0_18 = arith.constant 0 : index
      %c0_19 = arith.constant 0 : index
      %20 = vector.load %arg9[%c0_18, %c0_19] : memref<8x128xbf16, #tpu.memory_space<vmem>>, vector<8x128xbf16>
      tpu.vector_store %arg9[%c0_18, %c0_19], %19 {strides = array<i32>} : memref<8x128xbf16, #tpu.memory_space<vmem>>, vector<8x128xbf16>,
    } else {
    }
    %c0 = arith.constant 0 : index
    %c0_1 = arith.constant 0 : index
    %3 = vector.load %arg9[%c0, %c0_1] : memref<8x128xbf16, #tpu.memory_space<vmem>>, vector<8x128xbf16>
    %c0_2 = arith.constant 0 : index
    %c0_3 = arith.constant 0 : index
    %4 = vector.load %arg3[%c0_2, %c0_3] : memref<128x2048xbf16, #tpu.memory_space<vmem>>, vector<128x2048xbf16>
    %cst = arith.constant dense<0.000000e+00> : vector<8x2048xf32>
    %5 = tpu.matmul %3, %4, %cst {dimension_numbers = #tpu.dot_dimension_numbers<[1], [0], [0], [1], [0, 0, 1, 1], [], []>} : vector<8x128xbf16>, vector<128x2048xbf16>, vector<8x2048xf32> -> vector<8x2048xf32>
    %cst_4 = arith.constant 0.000000e+00 : f32
    %6 = vector.broadcast %cst_4 : f32 to vector<8x2048xf32>
    %7 = arith.maximumf %5, %6 : vector<8x2048xf32>
    %8 = arith.truncf %7 : vector<8x2048xf32> to vector<8x2048xbf16>
    %c0_5 = arith.constant 0 : index
    %c0_6 = arith.constant 0 : index
    %9 = vector.load %arg8[%c0_5, %c0_6] : memref<8x128xf32, #tpu.memory_space<vmem>>, vector<8x128xf32>
    %c0_7 = arith.constant 0 : index
    %c0_8 = arith.constant 0 : index
    %10 = vector.load %arg4[%c0_7, %c0_8] : memref<2048x128xbf16, #tpu.memory_space<vmem>>, vector<2048x128xbf16>
    %cst_9 = arith.constant dense<0.000000e+00> : vector<8x128xf32>
    %11 = tpu.matmul %8, %10, %cst_9 {dimension_numbers = #tpu.dot_dimension_numbers<[1], [0], [0], [1], [0, 0, 1, 1], [], []>} : vector<8x2048xbf16>, vector<2048x128xbf16>, vector<8x128xf32> -> vector<8x128xf32>
    %12 = arith.addf %9, %11 : vector<8x128xf32>
    %c0_10 = arith.constant 0 : index
    %c0_11 = arith.constant 0 : index
    %13 = vector.load %arg8[%c0_10, %c0_11] : memref<8x128xf32, #tpu.memory_space<vmem>>, vector<8x128xf32>
    tpu.vector_store %arg8[%c0_10, %c0_11], %12 {strides = array<i32>} : memref<8x128xf32, #tpu.memory_space<vmem>>, vector<8x128xf32>,
    %c0_i32_12 = arith.constant 0 : i32
    %14 = arith.cmpi eq, %arg1, %c0_i32_12 : i32
    %15 = arith.extui %14 : i1 to i32
    %c0_i32_13 = arith.constant 0 : i32
    %16 = arith.cmpi ne, %15, %c0_i32_13 : i32
    scf.if %16 {
      %c0_14 = arith.constant 0 : index
      %c0_15 = arith.constant 0 : index
      %17 = vector.load %arg8[%c0_14, %c0_15] : memref<8x128xf32, #tpu.memory_space<vmem>>, vector<8x128xf32>
      %cst_16 = arith.constant dense<0.000000e+00> : vector<8xf32>
      %18 = vector.multi_reduction <add>, %17, %cst_16 [1] : vector<8x128xf32> to vector<8xf32>
      %19 = vector.shape_cast %18 : vector<8xf32> to vector<8x1xf32>
      %20 = arith.mulf %17, %17 : vector<8x128xf32>
      %cst_17 = arith.constant dense<0.000000e+00> : vector<8xf32>
      %21 = vector.multi_reduction <add>, %20, %cst_17 [1] : vector<8x128xf32> to vector<8xf32>
      %22 = vector.shape_cast %21 : vector<8xf32> to vector<8x1xf32>
      %cst_18 = arith.constant 3.125000e-02 : f32
      %23 = vector.broadcast %cst_18 : f32 to vector<8x1xf32>
      %24 = arith.mulf %19, %23 : vector<8x1xf32>
      %cst_19 = arith.constant 3.125000e-02 : f32
      %25 = vector.broadcast %cst_19 : f32 to vector<8x1xf32>
      %26 = arith.mulf %22, %25 : vector<8x1xf32>
      %27 = arith.mulf %24, %24 : vector<8x1xf32>
      %28 = arith.subf %26, %27 : vector<8x1xf32>
      %cst_20 = arith.constant 0.000000e+00 : f32
      %29 = vector.broadcast %cst_20 : f32 to vector<8x1xf32>
      %30 = arith.maximumf %28, %29 : vector<8x1xf32>
      %31 = vector.broadcast %24 : vector<8x1xf32> to vector<8x128xf32>
      %32 = arith.subf %17, %31 : vector<8x128xf32>
      %cst_21 = arith.constant 9.99999974E-6 : f32
      %33 = vector.broadcast %cst_21 : f32 to vector<8x1xf32>
      %34 = arith.addf %30, %33 : vector<8x1xf32>
      %35 = math.rsqrt %34 : vector<8x1xf32>
      %36 = vector.broadcast %35 : vector<8x1xf32> to vector<8x128xf32>
      %37 = arith.mulf %32, %36 : vector<8x128xf32>
      %c0_22 = arith.constant 0 : index
      %c0_23 = arith.constant 0 : index
      %38 = vector.load %arg5[%c0_22, %c0_23] : memref<1x128xf32, #tpu.memory_space<vmem>>, vector<1x128xf32>
      %39 = vector.broadcast %38 : vector<1x128xf32> to vector<8x128xf32>
      %40 = arith.mulf %37, %39 : vector<8x128xf32>
      %c0_24 = arith.constant 0 : index
      %c0_25 = arith.constant 0 : index
      %41 = vector.load %arg6[%c0_24, %c0_25] : memref<1x128xf32, #tpu.memory_space<vmem>>, vector<1x128xf32>
      %42 = vector.broadcast %41 : vector<1x128xf32> to vector<8x128xf32>
      %43 = arith.addf %40, %42 : vector<8x128xf32>
      %c0_26 = arith.constant 0 : index
      %c0_27 = arith.constant 0 : index
      %44 = vector.load %arg7[%c0_26, %c0_27] : memref<8x128xf32, #tpu.memory_space<vmem>>, vector<8x128xf32>
      tpu.vector_store %arg7[%c0_26, %c0_27], %43 {strides = array<i32>} : memref<8x128xf32, #tpu.memory_space<vmem>>, vector<8x128xf32>,
    } else {
    }
    return
  }
  func.func @transform_0(%arg0: i32, %arg1: i32) -> (i32, i32) {
    %c0_i32 = arith.constant 0 : i32
    %c0_i32_0 = arith.constant 0 : i32
    return %arg0, %c0_i32 : i32, i32
  }
  func.func @transform_1(%arg0: i32, %arg1: i32) -> (i32, i32) {
    %c0_i32 = arith.constant 0 : i32
    %c0_i32_0 = arith.constant 0 : i32
    return %c0_i32, %arg1 : i32, i32
  }
  func.func @transform_2(%arg0: i32, %arg1: i32) -> (i32, i32) {
    %c0_i32 = arith.constant 0 : i32
    %c0_i32_0 = arith.constant 0 : i32
    return %arg1, %c0_i32 : i32, i32
  }
  func.func @transform_3(%arg0: i32, %arg1: i32) -> (i32, i32) {
    %c0_i32 = arith.constant 0 : i32
    %c0_i32_0 = arith.constant 0 : i32
    %c0_i32_1 = arith.constant 0 : i32
    return %c0_i32, %c0_i32_0 : i32, i32
  }
  func.func @transform_4(%arg0: i32, %arg1: i32) -> (i32, i32) {
    %c0_i32 = arith.constant 0 : i32
    %c0_i32_0 = arith.constant 0 : i32
    %c0_i32_1 = arith.constant 0 : i32
    return %c0_i32, %c0_i32_0 : i32, i32
  }
  func.func @transform_5(%arg0: i32, %arg1: i32) -> (i32, i32) {
    %c0_i32 = arith.constant 0 : i32
    %c0_i32_0 = arith.constant 0 : i32
    return %arg0, %c0_i32 : i32, i32
  }
}

</mosaic_0001>

<bundles_post_ra>
// kernel: tpu_custom_call.1
= control target key start
LH: loop header
LB: loop body
LE: loop exit
PB: predicated region body
PF: predicated region fallthrough
CT: control target
= control target key end

     0   :  { %10 = vsyncpa [#allocation5], 0  ;;  %s4096_s0 = inlined_call_operand.hbm [shape: f32[16,128], index: 0, kind: input, shape index: {}]   ;;  %s4097_s1 = inlined_call_operand.hbm [shape: bf16[128,2048], index: 1, kind: input, shape index: {}]   ;;  %s4098_s2 = inlined_call_operand.hbm [shape: bf16[2048,128], index: 2, kind: input, shape index: {}]   ;;  %s4099_s3 = inlined_call_operand.vmem [shape: f32[1,128], index: 3, kind: input, shape index: {}]   ;;  %s4100_s4 = inlined_call_operand.vmem [shape: f32[1,128], index: 4, kind: input, shape index: {}]   ;;  %s4101_s5 = inlined_call_operand.hbm [shape: f32[16,128], index: 5, kind: output, shape index: {}]  }
   0x1   :  { %12 = vsyncpa [#allocation5 + $0x1], 0 }
   0x2   :  { %13 = vsyncpa [#allocation8], 0 }
   0x3   :  { %14 = vsyncpa [#allocation6], 0 }
   0x4   :  { %16 = vsyncpa [#allocation6 + $0x1], 0  ;;  %s3816_s18 = smov 0   ;;  %s3818_s19 = smov 0  }
   0x5   :  { %s3820_s20 = smov 0   ;;  %s3822_s21 = smov 0  }
   0x6   :  { %s3824_s22 = smov 0   ;;  %s3826_s23 = smov 0  }
   0x7 LB: > { %s2934_s24 = sadd.s32 4294967295, %s3776_s23   ;;  %s2935_s25 = sadd.s32 4294967294, %s3776_s23   ;;  %s3776_s23 = sphi %s3826_s23, %s22_s23   ;;  %s3772_s22 = sphi %s3824_s22, %s4123_s22   ;;  %s3768_s21 = sphi %s3822_s21, %s4122_s21   ;;  %s3764_s20 = sphi %s3820_s20, %s4121_s20   ;;  %s3760_s19 = sphi %s3818_s19, %s4120_s19   ;;  %s3756_s18 = sphi %s3816_s18, %s4119_s18  }
   0x8   : > { %p54_p0 = scmp.ne.s32.totalorder %s3760_s19, %s3756_s18  ;;  %p3850_p1 = scmp.eq.s32.totalorder %s2934_s24, 0 }
   0x9   : > { %p3854_p2 = scmp.eq.s32.totalorder %s2934_s24, 1  ;;  %p178_p3 = scmp.eq.s32.totalorder %s2935_s25, 1 }
   0xa   : > { %s4106_s26 = scalar_select %p3850_p1, 1, 0 }
   0xb   : > { %p3860_p4 = por %p3850_p1, %p54_p0  ;;  %p2936_p5 = scmp.ge.s32.totalorder %s3776_s23, 1 }
   0xc   : > { %p3865_p6 = por %p178_p3, %p54_p0  ;;  %p185_p7 = scmp.lt.s32.totalorder %s3776_s23, 3 }
   0xd   : > { %s4108_s28 = scalar_select %p3860_p4, 1, 0 }
   0xe   : > { %s4109_s29 = scalar_select %p3865_p6, 1, 0 }
   0xf   : > { %p3870_p8 = pnand %p2936_p5, %p185_p7  ;;  %s3778_s6 = smov [#allocation7]  }
  0x10   : > { %s200_s7 = sshll.u32 %s3778_s6, 4  ;;  %s3779_s9 = smov [#allocation9]   ;;  %s3874_s7 = int_to_ptr.vmem [resolvable:$true] %s200_s7 }
  0x11   : > { %p3397_p9 = pneg %p3870_p8  ;;  %s216_s10 = sshll.u32 %s3779_s9, 4  ;;  %s3885_s10 = int_to_ptr.vmem [resolvable:$true] %s216_s10 }
  0x12   : > { %s3604_s13 = scalar_lea.hbm %s4097_s1, 16384 }
  0x13   : > { %p3881_p11 = pnand %p3397_p9, %p3850_p1  ;;  %p3605_p12 = scmp.ne.s32.totalorder %s4097_s1, %s3604_s13 }
  0x14   : > { %p3611_p5 = scmp.lt.u32.totalorder %s3604_s13, %s4097_s1 }
  0x15   : > { %p3606_p13 = pneg %p3881_p11 }
  0x17   : > { %p3607_p0 = pnand %p3606_p13, %p3605_p12 }
  0x19   : > { %p3608_p3 = pneg %p3607_p0 }
  0x1b   : > { %p3613_p7 = pnand %p3611_p5, %p3608_p3 }
  0x1d   : > { %3616 = shalt.err (!%p3613_p7)
}
  0x1e   : > { %s3617_s24 = scalar_lea.vmem %s3874_s7, 16384  ;;  %p3625_p1 = scmp.lt.s32.totalorder %s3874_s7, %s3874_s7 }
  0x1f   : > { %p3618_p9 = scmp.ne.s32.totalorder %s3874_s7, %s3617_s24  ;;  %p3626_p12 = scmp.lt.s32.totalorder %s3617_s24, %s3617_s24 }
  0x21   : > { %p3620_p10 = pnand %p3618_p9, %p3606_p13  ;;  %p3627_p0 = por %p3626_p12, %p3625_p1 }
  0x23   : > { %p3621_p6 = pneg %p3620_p10 }
  0x25   : > { %p3628_p4 = pnand %p3627_p0, %p3621_p6 }
  0x27   : > { %3631 = shalt.err (!%p3628_p4)
}
  0x28   : > { %s3780_s25 = smov 1024   ;;  %s3781_s6 = smov 64  }
  0x29   : > { %3400 = dma.hbm_to_vmem [thread:$0]  (!%p3881_p11), %s4097_s1, 16384, %s3874_s7, [#allocation8], %s3780_s25, %s3780_s25, %s3781_s6  }
  0x2a   : > { %s3632_s14 = scalar_lea.hbm %s4098_s2, 16384 }
  0x2b   : > { %p3633_p1 = scmp.ne.s32.totalorder %s4098_s2, %s3632_s14  ;;  %p3639_p10 = scmp.lt.u32.totalorder %s3632_s14, %s4098_s2 }
  0x2d   : > { %p3635_p4 = pnand %p3633_p1, %p3606_p13 }
  0x2f   : > { %p3636_p6 = pneg %p3635_p4 }
  0x31   : > { %p3641_p3 = pnand %p3639_p10, %p3636_p6 }
  0x33   : > { %3644 = shalt.err (!%p3641_p3)
}
  0x34   : > { %s3645_s7 = scalar_lea.vmem %s3885_s10, 16384  ;;  %p3653_p12 = scmp.lt.s32.totalorder %s3885_s10, %s3885_s10 }
  0x35   : > { %p3646_p5 = scmp.ne.s32.totalorder %s3885_s10, %s3645_s7  ;;  %p3654_p0 = scmp.lt.s32.totalorder %s3645_s7, %s3645_s7 }
  0x37   : > { %p3648_p7 = pnand %p3646_p5, %p3606_p13  ;;  %p3655_p1 = por %p3654_p0, %p3653_p12 }
  0x39   : > { %p3649_p9 = pneg %p3648_p7 }
  0x3b   : > { %p3656_p4 = pnand %p3655_p1, %p3649_p9 }
  0x3d   : > { %3659 = shalt.err (!%p3656_p4)
}
  0x3e   : > { %s3782_s25 = smov 4   ;;  %s41_s12 = sadd.s32 1, %s3764_s20 }
  0x3f   : > { %3403 = dma.hbm_to_vmem [thread:$0]  (!%p3881_p11), %s4098_s2, 16384, %s3885_s10, [#allocation8], %s3781_s6, %s3781_s6, %s3782_s25  }
  0x40   : > { %s34_s13 = sadd.s32 1, %s3772_s22  ;;  %p48_p13 = scmp.ne.s32.totalorder %s3764_s20, %s3760_s19 }
  0x41   : > { %p36_p6 = scmp.ge.s32.totalorder %s34_s13, 2  ;;  %p49_p10 = scmp.eq.s32.totalorder %s3776_s23, 0 }
  0x42   : > { %p3946_p3 = por %p3854_p2, %p48_p13  ;;  %p3414_p5 = scmp.lt.s32.totalorder %s3776_s23, 2 }
  0x43   : > { %s4125_s13 = smov (%p36_p6, %s34_s13), 0  ;;  %p50_p7 = por %p49_p10, %p48_p13 }
  0x44   : > { %s4112_s8 = scalar_select %p3946_p3, 1, 0 }
  0x45   : > { %s236_s14 = sand.u32 1, %s3764_s20   ;;  %s38_s15 = ssub.s32 %s3772_s22, %s4125_s13 }
  0x46   : > { %p39_p9 = scmp.eq.s32.totalorder %s38_s15, 0  ;;  %s2940_s10 = sshll.u32 %s236_s14, 3 }
  0x47   : > { %s2941_s6 = sshll.u32 %s3772_s22, 7  ;;  %s240_s7 = scalar_lea.vmem [#allocation4], %s2940_s10 }
  0x48   : > { %s3958_s16 = scalar_select %p39_p9, %s3764_s20, %s41_s12  }
  0x49   : > { %s3963_s27 = scalar_lea.hbm %s4096_s0, %s2941_s6  ;;  %s247_s25 = sshll.u32 %s240_s7, 4  ;;  %s3965_s25 = int_to_ptr.vmem [resolvable:$true] %s247_s25 }
  0x4a   : > { %p3969_p2 = pnand %p3414_p5, %p50_p7  ;;  %s237_s11 = scalar_lea.sflag [#allocation5], %s236_s14 }
  0x4b   : > { %s3660_s12 = scalar_lea.hbm %s3963_s27, 128  ;;  %s3665_s6 = scalar_lea.hbm %s4096_s0, 256 }
  0x4c   : > { %p3661_p11 = scmp.ne.s32.totalorder %s3963_s27, %s3660_s12  ;;  %p3662_p12 = pneg %p3969_p2 }
  0x4d   : > { %p3666_p4 = scmp.lt.u32.totalorder %s3963_s27, %s4096_s0  ;;  %p3667_p13 = scmp.lt.u32.totalorder %s3665_s6, %s3660_s12 }
  0x4e   : > { %p3663_p0 = pnand %p3662_p12, %p3661_p11  ;;  %p3669_p10 = scmp.lt.u32.totalorder %s3660_s12, %s3963_s27 }
  0x4f   : > { %p3668_p6 = por %p3667_p13, %p3666_p4 }
  0x50   : > { %p3664_p1 = pneg %p3663_p0 }
  0x51   : > { %p3670_p5 = por %p3669_p10, %p3668_p6 }
  0x53   : > { %p3671_p7 = pnand %p3670_p5, %p3664_p1 }
  0x55   : > { %3674 = shalt.err (!%p3671_p7)
}
  0x56   : > { %s3675_s14 = scalar_lea.vmem %s3965_s25, 128  ;;  %s3783_s7 = smov [#allocation4]  }
  0x57   : > { %p3676_p9 = scmp.ne.s32.totalorder %s3965_s25, %s3675_s14  ;;  %s3680_s15 = sshll.u32 %s3783_s7, 4  ;;  %s3681_s15 = int_to_ptr.vmem [resolvable:$false] %s3680_s15 }
  0x58   : > { %s3682_s10 = scalar_lea.vmem %s3681_s15, 256  ;;  %p3683_p3 = scmp.lt.s32.totalorder %s3965_s25, %s3681_s15 }
  0x59   : > { %p3678_p11 = pnand %p3676_p9, %p3662_p12  ;;  %p3684_p4 = scmp.lt.s32.totalorder %s3682_s10, %s3675_s14 }
  0x5b   : > { %p3679_p0 = pneg %p3678_p11  ;;  %p3685_p13 = por %p3684_p4, %p3683_p3 }
  0x5d   : > { %p3686_p6 = pnand %p3685_p13, %p3679_p0 }
  0x5f   : > { %3689 = shalt.err (!%p3686_p6)
}
  0x60   : > { %3407 = dma.hbm_to_vmem [thread:$0]  (!%p3969_p2), %s3963_s27, 128, %s3965_s25, %s237_s11  }
  0x61   : > { %256 = sbr.rel (%p3870_p8) target bundleno = 864 (0x360), region = 40  ;;  %s4001_s12 = sand.u32 (!%p3870_p8), 1, %s3760_s19  }
  0x62   : > { %s2943_s6 = sshll.u32 (!%p3870_p8), %s4001_s12, 3  ;;  %s259_s17 = scalar_lea.sflag (!%p3870_p8), [#allocation5], %s4001_s12 }
  0x63   : > { %s4007_s24 = scalar_lea.vmem (!%p3870_p8), [#allocation4], %s2943_s6  ;;  %p4114_p3 = scmp.ne.s32.totalorder (!%p3870_p8), %s4108_s28, 0 }
  0x68   : > { %3743 = dma.done.wait (%p4114_p3), %s259_s17, 128  }
  0x69   : > { %3745 = vsyncadd (%p4114_p3), %s259_s17, 4294967168  ;;  %p4115_p2 = scmp.ne.s32.totalorder %s4106_s26, 0 }
  0x6b   : > { %3747 = dma.done.wait (%p4115_p2), [#allocation8], 32768  }
  0x6c   : > { %3749 = vsyncadd (%p4115_p2), [#allocation8], 4294934528  ;;  %v3784_v0 = vmov 0   ;;  %v309_v1 = vld [vmem:[#allocation7] sm:$0xff]  ;;  %v310_v3 = vld [vmem:[#allocation7 + $0x8] sm:$0xff]  ;;  %s3206_s25 = sshll.u32 %s3768_s21, 7 }
  0x6d   : > { %1109 = vmatprep.mubr.bf16.mxu0 %v3784_v0  ;;  %1150 = vmatprep.mubr.bf16.mxu1 %v3784_v0  ;;  %v317_v2 = vld [vmem:[#allocation7 + $0x40] sm:$0xff]  ;;  %v318_v5 = vld [vmem:[#allocation7 + $0x48] sm:$0xff]  ;;  %v304_v33 = vld [vmem:[%s4007_s24] sm:$0xff]  ;;  %s296_s9 = scalar_lea.vmem [#allocation10], %s2943_s6  ;;  %s4047_s15 = scalar_lea.hbm %s4101_s5, %s3206_s25 }
  0x6e   : > { %v2948_v4 = vcombine.high %v309_v1, %v317_v2  ;;  %v2947_v6 = vcombine.low %v309_v1, %v317_v2  ;;  %v325_v7 = vld [vmem:[#allocation7 + $0x80] sm:$0xff]  ;;  %v2950_v9 = vcombine.high %v310_v3, %v318_v5  ;;  %v2949_v10 = vcombine.low %v310_v3, %v318_v5  ;;  %v326_v12 = vld [vmem:[#allocation7 + $0x88] sm:$0xff]  ;;  %v311_v2 = vld [vmem:[#allocation7 + $0x10] sm:$0xff]  ;;  %s2833_s11 = sshll.u32 %s296_s9, 4  ;;  %s2820_s10 = scalar_lea.sflag [#allocation6], %s4001_s12  ;;  %s4049_s11 = int_to_ptr.vmem [resolvable:$true] %s2833_s11 }
  0x6f   : > { %v333_v8 = vld [vmem:[#allocation7 + $0xc0] sm:$0xff]  ;;  %v334_v13 = vld [vmem:[#allocation7 + $0xc8] sm:$0xff]  ;;  %v306_v36 = vpack.c.bf16 %v304_v33, %v304_v33  ;;  %v319_v3 = vld [vmem:[#allocation7 + $0x50] sm:$0xff]  ;;  %s3690_s17 = scalar_lea.vmem %s4049_s11, 128  ;;  %p4116_p12 = scmp.ne.s32.totalorder %s4112_s8, 0 }
  0x70   : > { %v2964_v11 = vcombine.high %v325_v7, %v333_v8  ;;  %v341_v14 = vld [vmem:[#allocation7 + $0x100] sm:$0xff]  ;;  %1077 = vmatprep.subr.bf16.mxu0 %v2948_v4  ;;  %v2966_v15 = vcombine.high %v326_v12, %v334_v13  ;;  %v342_v17 = vld [vmem:[#allocation7 + $0x108] sm:$0xff]  ;;  %1118 = vmatprep.subr.bf16.mxu1 %v2950_v9  ;;  %v2963_v19 = vcombine.low %v325_v7, %v333_v8  ;;  %v312_v4 = vld [vmem:[#allocation7 + $0x18] sm:$0xff]  ;;  %p3691_p8 = scmp.ne.s32.totalorder %s4049_s11, %s3690_s17  ;;  %s3785_s21 = smov [#allocation10]  }
  0x71   : > { %v349_v16 = vld [vmem:[#allocation7 + $0x140] sm:$0xff]  ;;  %v350_v18 = vld [vmem:[#allocation7 + $0x148] sm:$0xff]  ;;  %1078 = vmatpush1.bf16.msra.mxu0 %v2947_v6  ;;  %1119 = vmatpush1.bf16.msra.mxu1 %v2949_v10  ;;  %v2965_v20 = vcombine.low %v326_v12, %v334_v13  ;;  %307 = vst [vmem:[#allocation3] sm:$0xf] %v306_v36  ;;  %v320_v5 = vld [vmem:[#allocation7 + $0x58] sm:$0xff]  ;;  %v2952_v8 = vcombine.high %v311_v2, %v319_v3  ;;  %s3694_s6 = sshll.u32 %s3785_s21, 4  ;;  %s3695_s6 = int_to_ptr.vmem [resolvable:$false] %s3694_s6 }
  0x72   : > { %1079 = vmatprep.subr.bf16.mxu0 %v2964_v11  ;;  %v2980_v21 = vcombine.high %v341_v14, %v349_v16  ;;  %1120 = vmatprep.subr.bf16.mxu1 %v2966_v15  ;;  %v2982_v22 = vcombine.high %v342_v17, %v350_v18  ;;  %v357_v23 = vld [vmem:[#allocation7 + $0x180] sm:$0xff]  ;;  %v358_v25 = vld [vmem:[#allocation7 + $0x188] sm:$0xff]  ;;  %v2979_v27 = vcombine.low %v341_v14, %v349_v16  ;;  %v327_v10 = vld [vmem:[#allocation7 + $0x90] sm:$0xff]  ;;  %p3692_p1 = pnand %p3691_p8, %p4116_p12  ;;  %p3697_p5 = scmp.lt.s32.totalorder %s4049_s11, %s3695_s6 }
  0x73   : > { %v365_v24 = vld [vmem:[#allocation7 + $0x1c0] sm:$0xff]  ;;  %v366_v26 = vld [vmem:[#allocation7 + $0x1c8] sm:$0xff]  ;;  %v2981_v28 = vcombine.low %v342_v17, %v350_v18  ;;  %v2954_v9 = vcombine.high %v312_v4, %v320_v5  ;;  %v335_v11 = vld [vmem:[#allocation7 + $0xd0] sm:$0xff]  ;;  %v2951_v15 = vcombine.low %v311_v2, %v319_v3  ;;  %v2953_v16 = vcombine.low %v312_v4, %v320_v5 }
  0x74   : > { %v2996_v29 = vcombine.high %v357_v23, %v365_v24  ;;  %v2998_v30 = vcombine.high %v358_v25, %v366_v26  ;;  %v373_v31 = vld [vmem:[#allocation7 + $0x200] sm:$0xff]  ;;  %v374_v34 = vld [vmem:[#allocation7 + $0x208] sm:$0xff]  ;;  %v2995_v37 = vcombine.low %v357_v23, %v365_v24  ;;  %v2997_v38 = vcombine.low %v358_v25, %v366_v26  ;;  %v328_v12 = vld [vmem:[#allocation7 + $0x98] sm:$0xff]  ;;  %p3693_p10 = pneg %p3692_p1 }
  0x75   : > { %1080 = vmatpush1.bf16.msra.mxu0 %v2963_v19  ;;  %1121 = vmatpush1.bf16.msra.mxu1 %v2965_v20  ;;  %v381_v32 = vld [vmem:[#allocation7 + $0x240] sm:$0xff]  ;;  %v382_v35 = vld [vmem:[#allocation7 + $0x248] sm:$0xff]  ;;  %v336_v13 = vld [vmem:[#allocation7 + $0xd8] sm:$0xff]  ;;  %v2968_v17 = vcombine.high %v327_v10, %v335_v11  ;;  %v2967_v23 = vcombine.low %v327_v10, %v335_v11 }
  0x76   : > { %1081 = vmatprep.subr.bf16.mxu0 %v2980_v21  ;;  %1122 = vmatprep.subr.bf16.mxu1 %v2982_v22  ;;  %v3012_v39 = vcombine.high %v373_v31, %v381_v32  ;;  %v3014_v40 = vcombine.high %v374_v34, %v382_v35  ;;  %v389_v41 = vld [vmem:[#allocation7 + $0x280] sm:$0xff]  ;;  %v390_v43 = vld [vmem:[#allocation7 + $0x288] sm:$0xff]  ;;  %v3011_v45 = vcombine.low %v373_v31, %v381_v32  ;;  %v343_v19 = vld [vmem:[#allocation7 + $0x110] sm:$0xff] }
  0x77   : > { %v397_v42 = vld [vmem:[#allocation7 + $0x2c0] sm:$0xff]  ;;  %v398_v44 = vld [vmem:[#allocation7 + $0x2c8] sm:$0xff]  ;;  %v3013_v46 = vcombine.low %v374_v34, %v382_v35  ;;  %v2970_v18 = vcombine.high %v328_v12, %v336_v13  ;;  %v351_v20 = vld [vmem:[#allocation7 + $0x150] sm:$0xff]  ;;  %v2969_v24 = vcombine.low %v328_v12, %v336_v13 }
  0x78   : > { %v3028_v47 = vcombine.high %v389_v41, %v397_v42  ;;  %v3030_v48 = vcombine.high %v390_v43, %v398_v44  ;;  %v405_v49 = vld [vmem:[#allocation7 + $0x300] sm:$0xff]  ;;  %v406_v51 = vld [vmem:[#allocation7 + $0x308] sm:$0xff]  ;;  %v3027_v53 = vcombine.low %v389_v41, %v397_v42  ;;  %v3029_v54 = vcombine.low %v390_v43, %v398_v44  ;;  %v344_v21 = vld [vmem:[#allocation7 + $0x118] sm:$0xff] }
  0x79   : > { %1082 = vmatpush1.bf16.msra.mxu0 %v2979_v27  ;;  %1123 = vmatpush1.bf16.msra.mxu1 %v2981_v28  ;;  %v413_v50 = vld [vmem:[#allocation7 + $0x340] sm:$0xff]  ;;  %v414_v52 = vld [vmem:[#allocation7 + $0x348] sm:$0xff]  ;;  %v352_v22 = vld [vmem:[#allocation7 + $0x158] sm:$0xff]  ;;  %v2984_v25 = vcombine.high %v343_v19, %v351_v20  ;;  %v2983_v31 = vcombine.low %v343_v19, %v351_v20 }
  0x7a   : > { %1083 = vmatprep.subr.bf16.mxu0 %v2996_v29  ;;  %1124 = vmatprep.subr.bf16.mxu1 %v2998_v30  ;;  %v3044_v55 = vcombine.high %v405_v49, %v413_v50  ;;  %v3046_v56 = vcombine.high %v406_v51, %v414_v52  ;;  %v421_v57 = vld [vmem:[#allocation7 + $0x380] sm:$0xff]  ;;  %v422_v59 = vld [vmem:[#allocation7 + $0x388] sm:$0xff]  ;;  %v3043_v61 = vcombine.low %v405_v49, %v413_v50  ;;  %v359_v27 = vld [vmem:[#allocation7 + $0x190] sm:$0xff] }
  0x7b   : > { %v429_v58 = vld [vmem:[#allocation7 + $0x3c0] sm:$0xff]  ;;  %v430_v60 = vld [vmem:[#allocation7 + $0x3c8] sm:$0xff]  ;;  %v3045_v62 = vcombine.low %v406_v51, %v414_v52  ;;  %v2986_v26 = vcombine.high %v344_v21, %v352_v22  ;;  %v367_v28 = vld [vmem:[#allocation7 + $0x1d0] sm:$0xff]  ;;  %v2985_v32 = vcombine.low %v344_v21, %v352_v22 }
  0x7c   : > { %v3060_v63 = vcombine.high %v421_v57, %v429_v58  ;;  %v3062_v1 = vcombine.high %v422_v59, %v430_v60  ;;  %v3059_v6 = vcombine.low %v421_v57, %v429_v58  ;;  %v3061_v7 = vcombine.low %v422_v59, %v430_v60  ;;  %v4020_v14 = vld [vmem:[#allocation3] sm:$0xf]  ;;  %v360_v29 = vld [vmem:[#allocation7 + $0x198] sm:$0xff]  ;;  %v375_v35 = vld [vmem:[#allocation7 + $0x210] sm:$0xff] }
  0x7d   : > { %1084 = vmatpush1.bf16.msra.mxu0 %v2995_v37  ;;  %1125 = vmatpush1.bf16.msra.mxu1 %v2997_v38  ;;  %v368_v30 = vld [vmem:[#allocation7 + $0x1d8] sm:$0xff]  ;;  %v3000_v33 = vcombine.high %v359_v27, %v367_v28  ;;  %v383_v36 = vld [vmem:[#allocation7 + $0x250] sm:$0xff]  ;;  %v321_v4 = vld [vmem:[#allocation7 + $0x60] sm:$0xff] }
  0x7e   : > { %1085 = vmatprep.subr.bf16.mxu0 %v3012_v39  ;;  %1126 = vmatprep.subr.bf16.mxu1 %v3014_v40  ;;  %v3002_v34 = vcombine.high %v360_v29, %v368_v30  ;;  %v376_v37 = vld [vmem:[#allocation7 + $0x218] sm:$0xff]  ;;  %v2999_v39 = vcombine.low %v359_v27, %v367_v28  ;;  %v391_v40 = vld [vmem:[#allocation7 + $0x290] sm:$0xff]  ;;  %v3001_v41 = vcombine.low %v360_v29, %v368_v30  ;;  %v337_v12 = vld [vmem:[#allocation7 + $0xe0] sm:$0xff] }
  0x7f   : > { %v384_v38 = vld [vmem:[#allocation7 + $0x258] sm:$0xff]  ;;  %v3016_v42 = vcombine.high %v375_v35, %v383_v36  ;;  %v399_v43 = vld [vmem:[#allocation7 + $0x2d0] sm:$0xff]  ;;  %v353_v21 = vld [vmem:[#allocation7 + $0x160] sm:$0xff] }
  0x80   : > { %v3018_v44 = vcombine.high %v376_v37, %v384_v38  ;;  %v3017_v49 = vcombine.low %v376_v37, %v384_v38  ;;  %v3032_v50 = vcombine.high %v391_v40, %v399_v43  ;;  %v415_v51 = vld [vmem:[#allocation7 + $0x350] sm:$0xff]  ;;  %v369_v27 = vld [vmem:[#allocation7 + $0x1e0] sm:$0xff]  ;;  %v362_v30 = vld [vmem:[#allocation7 + $0x1a8] sm:$0xff] }
  0x81   : > { %1086 = vmatpush1.bf16.msra.mxu0 %v3011_v45  ;;  %1127 = vmatpush1.bf16.msra.mxu1 %v3013_v46  ;;  %v392_v45 = vld [vmem:[#allocation7 + $0x298] sm:$0xff]  ;;  %v431_v59 = vld [vmem:[#allocation7 + $0x3d0] sm:$0xff]  ;;  %v378_v38 = vld [vmem:[#allocation7 + $0x228] sm:$0xff] }
  0x82   : > { %1087 = vmatprep.subr.bf16.mxu0 %v3028_v47  ;;  %1128 = vmatprep.subr.bf16.mxu1 %v3030_v48  ;;  %v400_v46 = vld [vmem:[#allocation7 + $0x2d8] sm:$0xff]  ;;  %v3015_v47 = vcombine.low %v375_v35, %v383_v36  ;;  %v407_v48 = vld [vmem:[#allocation7 + $0x310] sm:$0xff]  ;;  %v385_v35 = vld [vmem:[#allocation7 + $0x260] sm:$0xff] }
  0x83   : > { %v3034_v52 = vcombine.high %v392_v45, %v400_v46  ;;  %v3033_v57 = vcombine.low %v392_v45, %v400_v46  ;;  %v3048_v58 = vcombine.high %v407_v48, %v415_v51  ;;  %v394_v46 = vld [vmem:[#allocation7 + $0x2a8] sm:$0xff] }
  0x85   : > { %1088 = vmatpush1.bf16.msra.mxu0 %v3027_v53  ;;  %1129 = vmatpush1.bf16.msra.mxu1 %v3029_v54  ;;  %v408_v53 = vld [vmem:[#allocation7 + $0x318] sm:$0xff] }
  0x86   : > { %1089 = vmatprep.subr.bf16.mxu0 %v3044_v55  ;;  %1130 = vmatprep.subr.bf16.mxu1 %v3046_v56  ;;  %v416_v54 = vld [vmem:[#allocation7 + $0x358] sm:$0xff]  ;;  %v3031_v55 = vcombine.low %v391_v40, %v399_v43  ;;  %v423_v56 = vld [vmem:[#allocation7 + $0x390] sm:$0xff]  ;;  %v401_v43 = vld [vmem:[#allocation7 + $0x2e0] sm:$0xff] }
  0x87   : > { %v3050_v60 = vcombine.high %v408_v53, %v416_v54  ;;  %v3049_v2 = vcombine.low %v408_v53, %v416_v54  ;;  %v3064_v3 = vcombine.high %v423_v56, %v431_v59  ;;  %v410_v54 = vld [vmem:[#allocation7 + $0x328] sm:$0xff] }
  0x89   : > { %1090 = vmatpush1.bf16.msra.mxu0 %v3043_v61  ;;  %1131 = vmatpush1.bf16.msra.mxu1 %v3045_v62  ;;  %v424_v61 = vld [vmem:[#allocation7 + $0x398] sm:$0xff] }
  0x8a   : > { %1091 = vmatprep.subr.bf16.mxu0 %v3060_v63  ;;  %1132 = vmatprep.subr.bf16.mxu1 %v3062_v1  ;;  %v432_v62 = vld [vmem:[#allocation7 + $0x3d8] sm:$0xff]  ;;  %v3047_v63 = vcombine.low %v407_v48, %v415_v51  ;;  %v313_v1 = vld [vmem:[#allocation7 + $0x20] sm:$0xff] }
  0x8b   : > { %v3066_v5 = vcombine.high %v424_v61, %v432_v62  ;;  %v3065_v10 = vcombine.low %v424_v61, %v432_v62  ;;  %v2956_v11 = vcombine.high %v313_v1, %v321_v4  ;;  %v417_v51 = vld [vmem:[#allocation7 + $0x360] sm:$0xff]  ;;  %v426_v62 = vld [vmem:[#allocation7 + $0x3a8] sm:$0xff] }
  0x8d   : > { %1092 = vmatpush1.bf16.msra.mxu0 %v3059_v6  ;;  %1133 = vmatpush1.bf16.msra.mxu1 %v3061_v7  ;;  %v314_v6 = vld [vmem:[#allocation7 + $0x28] sm:$0xff] }
  0x8e   : > { %1159 = vmatprep.subr.bf16.mxu0 %v2952_v8  ;;  %1200 = vmatprep.subr.bf16.mxu1 %v2954_v9  ;;  %v322_v7 = vld [vmem:[#allocation7 + $0x68] sm:$0xff]  ;;  %v3063_v8 = vcombine.low %v423_v56, %v431_v59  ;;  %v329_v9 = vld [vmem:[#allocation7 + $0xa0] sm:$0xff] }
  0x8f   : > { %v2958_v13 = vcombine.high %v314_v6, %v322_v7  ;;  %v2957_v19 = vcombine.low %v314_v6, %v322_v7  ;;  %v2972_v20 = vcombine.high %v329_v9, %v337_v12  ;;  %v433_v59 = vld [vmem:[#allocation7 + $0x3e0] sm:$0xff]  ;;  %v316_v7 = vld [vmem:[#allocation7 + $0x38] sm:$0xff] }
  0x90   : > { %1110 = vmatmul.mubr.bf16.vlgmr.msra.gmra.mrb[0].mxu0 %v4020_v14  ;;  %1151 = vmatmul.mubr.bf16.vlgmr.msra.gmra.mrb[0].mxu1 %v4020_v14 }
  0x91   : > { %1160 = vmatpush1.bf16.msra.mxu0 %v2951_v15  ;;  %1201 = vmatpush1.bf16.msra.mxu1 %v2953_v16  ;;  %v330_v15 = vld [vmem:[#allocation7 + $0xa8] sm:$0xff] }
  0x92   : > { %1161 = vmatprep.subr.bf16.mxu0 %v2968_v17  ;;  %1202 = vmatprep.subr.bf16.mxu1 %v2970_v18  ;;  %v338_v16 = vld [vmem:[#allocation7 + $0xe8] sm:$0xff]  ;;  %v2955_v17 = vcombine.low %v313_v1, %v321_v4  ;;  %v345_v18 = vld [vmem:[#allocation7 + $0x120] sm:$0xff]  ;;  %v323_v4 = vld [vmem:[#allocation7 + $0x70] sm:$0xff] }
  0x93   : > { %1191 = vmatprep.mubr.bf16.mxu0 %v3784_v0  ;;  %1232 = vmatprep.mubr.bf16.mxu1 %v3784_v0  ;;  %v2974_v22 = vcombine.high %v330_v15, %v338_v16  ;;  %v2973_v28 = vcombine.low %v330_v15, %v338_v16  ;;  %v2988_v29 = vcombine.high %v345_v18, %v353_v21  ;;  %v332_v16 = vld [vmem:[#allocation7 + $0xb8] sm:$0xff] }
  0x95   : > { %1162 = vmatpush1.bf16.msra.mxu0 %v2967_v23  ;;  %1203 = vmatpush1.bf16.msra.mxu1 %v2969_v24  ;;  %v346_v23 = vld [vmem:[#allocation7 + $0x128] sm:$0xff] }
  0x96   : > { %1163 = vmatprep.subr.bf16.mxu0 %v2984_v25  ;;  %1204 = vmatprep.subr.bf16.mxu1 %v2986_v26  ;;  %v354_v24 = vld [vmem:[#allocation7 + $0x168] sm:$0xff]  ;;  %v2971_v25 = vcombine.low %v329_v9, %v337_v12  ;;  %v361_v26 = vld [vmem:[#allocation7 + $0x1a0] sm:$0xff]  ;;  %v339_v12 = vld [vmem:[#allocation7 + $0xf0] sm:$0xff] }
  0x97   : > { %v2989_v36 = vcombine.low %v346_v23, %v354_v24  ;;  %v3004_v37 = vcombine.high %v361_v26, %v369_v27 }
  0x99   : > { %1164 = vmatpush1.bf16.msra.mxu0 %v2983_v31  ;;  %1205 = vmatpush1.bf16.msra.mxu1 %v2985_v32  ;;  %v370_v31 = vld [vmem:[#allocation7 + $0x1e8] sm:$0xff]  ;;  %v2990_v32 = vcombine.high %v346_v23, %v354_v24  ;;  %v348_v24 = vld [vmem:[#allocation7 + $0x138] sm:$0xff] }
  0x9a   : > { %1165 = vmatprep.subr.bf16.mxu0 %v3000_v33  ;;  %1206 = vmatprep.subr.bf16.mxu1 %v3002_v34  ;;  %v2987_v33 = vcombine.low %v345_v18, %v353_v21  ;;  %v377_v34 = vld [vmem:[#allocation7 + $0x220] sm:$0xff]  ;;  %v3006_v40 = vcombine.high %v362_v30, %v370_v31  ;;  %v355_v21 = vld [vmem:[#allocation7 + $0x170] sm:$0xff] }
  0x9b   : > { %v3020_v45 = vcombine.high %v377_v34, %v385_v35 }
  0x9d   : > { %1166 = vmatpush1.bf16.msra.mxu0 %v2999_v39  ;;  %1207 = vmatpush1.bf16.msra.mxu1 %v3001_v41  ;;  %v386_v39 = vld [vmem:[#allocation7 + $0x268] sm:$0xff]  ;;  %v3003_v41 = vcombine.low %v361_v26, %v369_v27 }
  0x9e   : > { %1167 = vmatprep.subr.bf16.mxu0 %v3016_v42  ;;  %1208 = vmatprep.subr.bf16.mxu1 %v3018_v44  ;;  %v393_v42 = vld [vmem:[#allocation7 + $0x2a0] sm:$0xff]  ;;  %v3005_v44 = vcombine.low %v362_v30, %v370_v31  ;;  %v3022_v48 = vcombine.high %v378_v38, %v386_v39 }
  0x9f   : > { %v3036_v53 = vcombine.high %v393_v42, %v401_v43 }
  0xa1   : > { %1168 = vmatpush1.bf16.msra.mxu0 %v3015_v47  ;;  %1209 = vmatpush1.bf16.msra.mxu1 %v3017_v49  ;;  %v402_v47 = vld [vmem:[#allocation7 + $0x2e8] sm:$0xff]  ;;  %v3019_v49 = vcombine.low %v377_v34, %v385_v35 }
  0xa2   : > { %1169 = vmatprep.subr.bf16.mxu0 %v3032_v50  ;;  %1210 = vmatprep.subr.bf16.mxu1 %v3034_v52  ;;  %v409_v50 = vld [vmem:[#allocation7 + $0x320] sm:$0xff]  ;;  %v3021_v52 = vcombine.low %v378_v38, %v386_v39  ;;  %v3038_v56 = vcombine.high %v394_v46, %v402_v47  ;;  %v380_v39 = vld [vmem:[#allocation7 + $0x238] sm:$0xff] }
  0xa3   : > { %v3052_v61 = vcombine.high %v409_v50, %v417_v51 }
  0xa5   : > { %1170 = vmatpush1.bf16.msra.mxu0 %v3031_v55  ;;  %1211 = vmatpush1.bf16.msra.mxu1 %v3033_v57  ;;  %v418_v55 = vld [vmem:[#allocation7 + $0x368] sm:$0xff]  ;;  %v3035_v57 = vcombine.low %v393_v42, %v401_v43  ;;  %v395_v43 = vld [vmem:[#allocation7 + $0x2b0] sm:$0xff] }
  0xa6   : > { %1171 = vmatprep.subr.bf16.mxu0 %v3048_v58  ;;  %1212 = vmatprep.subr.bf16.mxu1 %v3050_v60  ;;  %v425_v58 = vld [vmem:[#allocation7 + $0x3a0] sm:$0xff]  ;;  %v3037_v60 = vcombine.low %v394_v46, %v402_v47  ;;  %v3054_v1 = vcombine.high %v410_v54, %v418_v55  ;;  %v396_v46 = vld [vmem:[#allocation7 + $0x2b8] sm:$0xff] }
  0xa7   : > { %v3068_v6 = vcombine.high %v425_v58, %v433_v59  ;;  %v404_v47 = vld [vmem:[#allocation7 + $0x2f8] sm:$0xff] }
  0xa9   : > { %1172 = vmatpush1.bf16.msra.mxu0 %v3047_v63  ;;  %1213 = vmatpush1.bf16.msra.mxu1 %v3049_v2  ;;  %v434_v63 = vld [vmem:[#allocation7 + $0x3e8] sm:$0xff]  ;;  %v3051_v2 = vcombine.low %v409_v50, %v417_v51  ;;  %v411_v50 = vld [vmem:[#allocation7 + $0x330] sm:$0xff] }
  0xaa   : > { %1173 = vmatprep.subr.bf16.mxu0 %v3064_v3  ;;  %1214 = vmatprep.subr.bf16.mxu1 %v3066_v5  ;;  %v315_v3 = vld [vmem:[#allocation7 + $0x30] sm:$0xff]  ;;  %v3053_v5 = vcombine.low %v410_v54, %v418_v55  ;;  %v3070_v9 = vcombine.high %v426_v62, %v434_v63  ;;  %v412_v54 = vld [vmem:[#allocation7 + $0x338] sm:$0xff] }
  0xab   : > { %v2960_v15 = vcombine.high %v315_v3, %v323_v4  ;;  %v419_v51 = vld [vmem:[#allocation7 + $0x370] sm:$0xff]  ;;  %v420_v55 = vld [vmem:[#allocation7 + $0x378] sm:$0xff] }
  0xad   : > { %1174 = vmatpush1.bf16.msra.mxu0 %v3063_v8  ;;  %1215 = vmatpush1.bf16.msra.mxu1 %v3065_v10  ;;  %v324_v8 = vld [vmem:[#allocation7 + $0x78] sm:$0xff]  ;;  %v3067_v10 = vcombine.low %v425_v58, %v433_v59  ;;  %v427_v58 = vld [vmem:[#allocation7 + $0x3b0] sm:$0xff] }
  0xae   : > { %1241 = vmatprep.subr.bf16.mxu0 %v2956_v11  ;;  %1282 = vmatprep.subr.bf16.mxu1 %v2958_v13  ;;  %v331_v11 = vld [vmem:[#allocation7 + $0xb0] sm:$0xff]  ;;  %v3069_v13 = vcombine.low %v426_v62, %v434_v63  ;;  %v2962_v18 = vcombine.high %v316_v7, %v324_v8  ;;  %v428_v62 = vld [vmem:[#allocation7 + $0x3b8] sm:$0xff] }
  0xaf   : > { %v2976_v23 = vcombine.high %v331_v11, %v339_v12  ;;  %v2975_v27 = vcombine.low %v331_v11, %v339_v12  ;;  %v435_v59 = vld [vmem:[#allocation7 + $0x3f0] sm:$0xff]  ;;  %v436_v63 = vld [vmem:[#allocation7 + $0x3f8] sm:$0xff]  ;;  %v3475_v11 = vld [vmem:[#allocation9 + $0x80] sm:$0xff]  }
  0xb0   : > { %1192 = vmatmul.mubr.bf16.vlgmr.msra.gmra.mrb[4].mxu0 %v4020_v14  ;;  %1233 = vmatmul.mubr.bf16.vlgmr.msra.gmra.mrb[4].mxu1 %v4020_v14  ;;  %v3476_v12 = vld [vmem:[#allocation9 + $0x48] sm:$0xff]  }
  0xb1   : > { %1242 = vmatpush1.bf16.msra.mxu0 %v2955_v17  ;;  %1283 = vmatpush1.bf16.msra.mxu1 %v2957_v19  ;;  %v340_v17 = vld [vmem:[#allocation7 + $0xf8] sm:$0xff]  ;;  %v2959_v19 = vcombine.low %v315_v3, %v323_v4  ;;  %v3057_v3 = vcombine.low %v412_v54, %v420_v55  ;;  %v3072_v4 = vcombine.high %v427_v58, %v435_v59 }
  0xb2   : > { %1243 = vmatprep.subr.bf16.mxu0 %v2972_v20  ;;  %1284 = vmatprep.subr.bf16.mxu1 %v2974_v22  ;;  %v347_v20 = vld [vmem:[#allocation7 + $0x130] sm:$0xff]  ;;  %v2961_v22 = vcombine.low %v316_v7, %v324_v8  ;;  %v2978_v26 = vcombine.high %v332_v16, %v340_v17  ;;  %v2977_v30 = vcombine.low %v332_v16, %v340_v17  ;;  %v3472_v8 = vld [vmem:[#allocation9 + $0x40] sm:$0xff]   ;;  %v3478_v16 = vld [vmem:[#allocation9 + $0x8] sm:$0xff]  }
  0xb3   : > { %1273 = vmatprep.mubr.bf16.mxu0 %v3784_v0  ;;  %1314 = vmatprep.mubr.bf16.mxu1 %v3784_v0  ;;  %v2992_v31 = vcombine.high %v347_v20, %v355_v21  ;;  %v2991_v35 = vcombine.low %v347_v20, %v355_v21  ;;  %v3073_v7 = vcombine.low %v428_v62, %v436_v63  ;;  %v3479_v17 = vld [vmem:[#allocation9 + $0x88] sm:$0xff]   ;;  %v3482_v20 = vld [vmem:[#allocation9 + $0x10] sm:$0xff]  }
  0xb4   : > { %v3483_v21 = vld [vmem:[#allocation9 + $0x90] sm:$0xff]  }
  0xb5   : > { %1244 = vmatpush1.bf16.msra.mxu0 %v2971_v25  ;;  %1285 = vmatpush1.bf16.msra.mxu1 %v2973_v28  ;;  %v356_v25 = vld [vmem:[#allocation7 + $0x178] sm:$0xff]  ;;  %v363_v28 = vld [vmem:[#allocation7 + $0x1b0] sm:$0xff] }
  0xb6   : > { %1245 = vmatprep.subr.bf16.mxu0 %v2988_v29  ;;  %1286 = vmatprep.subr.bf16.mxu1 %v2990_v32  ;;  %v371_v29 = vld [vmem:[#allocation7 + $0x1f0] sm:$0xff]  ;;  %v364_v32 = vld [vmem:[#allocation7 + $0x1b8] sm:$0xff]  ;;  %v2994_v34 = vcombine.high %v348_v24, %v356_v25 }
  0xb7   : > { %v3008_v38 = vcombine.high %v363_v28, %v371_v29  ;;  %v3007_v42 = vcombine.low %v363_v28, %v371_v29  ;;  %v3490_v28 = vld [vmem:[#allocation9 + $0x20] sm:$0xff]  }
  0xb8   : > { %v3491_v29 = vld [vmem:[#allocation9 + $0xa0] sm:$0xff]  }
  0xb9   : > { %1246 = vmatpush1.bf16.msra.mxu0 %v2987_v33  ;;  %1287 = vmatpush1.bf16.msra.mxu1 %v2989_v36  ;;  %v372_v33 = vld [vmem:[#allocation7 + $0x1f8] sm:$0xff]  ;;  %v379_v36 = vld [vmem:[#allocation7 + $0x230] sm:$0xff] }
  0xba   : > { %1247 = vmatprep.subr.bf16.mxu0 %v3004_v37  ;;  %1288 = vmatprep.subr.bf16.mxu1 %v3006_v40  ;;  %v2993_v37 = vcombine.low %v348_v24, %v356_v25  ;;  %v388_v40 = vld [vmem:[#allocation7 + $0x278] sm:$0xff] }
  0xbb   : > { %v3486_v24 = vld [vmem:[#allocation9 + $0x18] sm:$0xff]  }
  0xbc   : > { %v3487_v25 = vld [vmem:[#allocation9 + $0x98] sm:$0xff]  }
  0xbd   : > { %1248 = vmatpush1.bf16.msra.mxu0 %v3003_v41  ;;  %1289 = vmatpush1.bf16.msra.mxu1 %v3005_v44  ;;  %v3010_v41 = vcombine.high %v364_v32, %v372_v33  ;;  %v403_v44 = vld [vmem:[#allocation7 + $0x2f0] sm:$0xff] }
  0xbe   : > { %1249 = vmatprep.subr.bf16.mxu0 %v3020_v45  ;;  %1290 = vmatprep.subr.bf16.mxu1 %v3022_v48  ;;  %v3009_v45 = vcombine.low %v364_v32, %v372_v33  ;;  %v3026_v48 = vcombine.high %v380_v39, %v388_v40  ;;  %v3494_v32 = vld [vmem:[#allocation9 + $0x28] sm:$0xff]  }
  0xbf   : > { %v3495_v33 = vld [vmem:[#allocation9 + $0xa8] sm:$0xff]  }
  0xc1   : > { %1250 = vmatpush1.bf16.msra.mxu0 %v3019_v49  ;;  %1291 = vmatpush1.bf16.msra.mxu1 %v3021_v52  ;;  %v3025_v52 = vcombine.low %v380_v39, %v388_v40  ;;  %v3502_v39 = vld [vmem:[#allocation9 + $0x38] sm:$0xff]  }
  0xc2   : > { %1251 = vmatprep.subr.bf16.mxu0 %v3036_v53  ;;  %1292 = vmatprep.subr.bf16.mxu1 %v3038_v56  ;;  %v3040_v53 = vcombine.high %v395_v43, %v403_v44  ;;  %v3042_v56 = vcombine.high %v396_v46, %v404_v47  ;;  %v3503_v40 = vld [vmem:[#allocation9 + $0xb8] sm:$0xff]  }
  0xc5   : > { %1252 = vmatpush1.bf16.msra.mxu0 %v3035_v57  ;;  %1293 = vmatpush1.bf16.msra.mxu1 %v3037_v60  ;;  %v3039_v57 = vcombine.low %v395_v43, %v403_v44  ;;  %v3041_v60 = vcombine.low %v396_v46, %v404_v47 }
  0xc6   : > { %1253 = vmatprep.subr.bf16.mxu0 %v3052_v61  ;;  %1294 = vmatprep.subr.bf16.mxu1 %v3054_v1  ;;  %v3056_v61 = vcombine.high %v411_v50, %v419_v51  ;;  %v3058_v1 = vcombine.high %v412_v54, %v420_v55 }
  0xc9   : > { %1254 = vmatpush1.bf16.msra.mxu0 %v3051_v2  ;;  %1295 = vmatpush1.bf16.msra.mxu1 %v3053_v5  ;;  %v3055_v2 = vcombine.low %v411_v50, %v419_v51  ;;  %v3074_v5 = vcombine.high %v428_v62, %v436_v63  ;;  %v3510_v62 = vld [vmem:[#allocation9 + $0x108] sm:$0xff]  }
  0xca   : > { %1255 = vmatprep.subr.bf16.mxu0 %v3068_v6  ;;  %1296 = vmatprep.subr.bf16.mxu1 %v3070_v9  ;;  %v3071_v6 = vcombine.low %v427_v58, %v435_v59  ;;  %v3473_v9 = vld [vmem:[#allocation9 + $0xc0] sm:$0xff]   ;;  %v3511_v63 = vld [vmem:[#allocation9 + $0x188] sm:$0xff]  }
  0xcb   : > { %v3507_v59 = vld [vmem:[#allocation9 + $0x180] sm:$0xff]  }
  0xcd   : > { %1256 = vmatpush1.bf16.msra.mxu0 %v3067_v10  ;;  %1297 = vmatpush1.bf16.msra.mxu1 %v3069_v13  ;;  %v3474_v10 = vld [vmem:[#allocation9] sm:$0xff]   ;;  %v3477_v13 = vld [vmem:[#allocation9 + $0xc8] sm:$0xff]  }
  0xce   : > { %1323 = vmatprep.subr.bf16.mxu0 %v2960_v15  ;;  %1364 = vmatprep.subr.bf16.mxu1 %v2962_v18  ;;  %v3602_v15 = vld [vmem:[#allocation3] sm:$0xf]  ;;  %v3480_v18 = vld [vmem:[#allocation9 + $0x50] sm:$0xff]  }
  0xd0   : > { %1274 = vmatmul.mubr.bf16.vlgmr.msra.gmra.mrb[8].mxu0 %v4020_v14  ;;  %1315 = vmatmul.mubr.bf16.vlgmr.msra.gmra.mrb[8].mxu1 %v4020_v14  ;;  %v387_v14 = vld [vmem:[#allocation7 + $0x270] sm:$0xff] }
  0xd1   : > { %1324 = vmatpush1.bf16.msra.mxu0 %v2959_v19  ;;  %1365 = vmatpush1.bf16.msra.mxu1 %v2961_v22  ;;  %v3023_v49 = vcombine.low %v379_v36, %v387_v14  ;;  %v3481_v19 = vld [vmem:[#allocation9 + $0xd0] sm:$0xff]   ;;  %v3484_v22 = vld [vmem:[#allocation9 + $0x58] sm:$0xff]  }
  0xd2   : > { %1325 = vmatprep.subr.bf16.mxu0 %v2976_v23  ;;  %1366 = vmatprep.subr.bf16.mxu1 %v2978_v26  ;;  %v3485_v23 = vld [vmem:[#allocation9 + $0xd8] sm:$0xff]   ;;  %v3488_v26 = vld [vmem:[#allocation9 + $0x60] sm:$0xff]  }
  0xd3   : > { %1355 = vmatprep.mubr.bf16.mxu0 %v3784_v0  ;;  %1396 = vmatprep.mubr.bf16.mxu1 %v3784_v0  ;;  %v3024_v0 = vcombine.high %v379_v36, %v387_v14  ;;  %v3498_v36 = vld [vmem:[#allocation9 + $0x30] sm:$0xff]  }
  0xd4   : > { %v3499_v14 = vld [vmem:[#allocation9 + $0xb0] sm:$0xff]  }
  0xd5   : > { %1326 = vmatpush1.bf16.msra.mxu0 %v2975_v27  ;;  %1367 = vmatpush1.bf16.msra.mxu1 %v2977_v30  ;;  %v3489_v27 = vld [vmem:[#allocation9 + $0xe0] sm:$0xff]   ;;  %v3492_v30 = vld [vmem:[#allocation9 + $0x68] sm:$0xff]  }
  0xd6   : > { %1327 = vmatprep.subr.bf16.mxu0 %v2992_v31  ;;  %1368 = vmatprep.subr.bf16.mxu1 %v2994_v34  ;;  %v3493_v31 = vld [vmem:[#allocation9 + $0xe8] sm:$0xff]   ;;  %v3496_v34 = vld [vmem:[#allocation9 + $0x70] sm:$0xff]  }
  0xd9   : > { %1328 = vmatpush1.bf16.msra.mxu0 %v2991_v35  ;;  %1369 = vmatpush1.bf16.msra.mxu1 %v2993_v37  ;;  %v3497_v35 = vld [vmem:[#allocation9 + $0xf0] sm:$0xff]   ;;  %v3500_v37 = vld [vmem:[#allocation9 + $0x78] sm:$0xff]  }
  0xda   : > { %1329 = vmatprep.subr.bf16.mxu0 %v3008_v38  ;;  %1370 = vmatprep.subr.bf16.mxu1 %v3010_v41  ;;  %v3501_v38 = vld [vmem:[#allocation9 + $0xf8] sm:$0xff]   ;;  %v3504_v41 = vld [vmem:[#allocation9 + $0x140] sm:$0xff]  }
  0xdd   : > { %1330 = vmatpush1.bf16.msra.mxu0 %v3007_v42  ;;  %1371 = vmatpush1.bf16.msra.mxu1 %v3009_v45  ;;  %v3505_v42 = vld [vmem:[#allocation9 + $0x1c0] sm:$0xff]  }
  0xde   : > { %1331 = vmatprep.subr.bf16.mxu0 %v3024_v0  ;;  %1372 = vmatprep.subr.bf16.mxu1 %v3026_v48 }
  0xe1   : > { %1332 = vmatpush1.bf16.msra.mxu0 %v3023_v49  ;;  %1373 = vmatpush1.bf16.msra.mxu1 %v3025_v52 }
  0xe2   : > { %1333 = vmatprep.subr.bf16.mxu0 %v3040_v53  ;;  %1374 = vmatprep.subr.bf16.mxu1 %v3042_v56 }
  0xe5   : > { %1334 = vmatpush1.bf16.msra.mxu0 %v3039_v57  ;;  %1375 = vmatpush1.bf16.msra.mxu1 %v3041_v60  ;;  %v3506_v57 = vld [vmem:[#allocation9 + $0x100] sm:$0xff]   ;;  %v3508_v60 = vld [vmem:[#allocation9 + $0x148] sm:$0xff]  }
  0xe6   : > { %1335 = vmatprep.subr.bf16.mxu0 %v3056_v61  ;;  %1376 = vmatprep.subr.bf16.mxu1 %v3058_v1  ;;  %v3509_v61 = vld [vmem:[#allocation9 + $0x1c8] sm:$0xff]   ;;  %v3512_v1 = vld [vmem:[#allocation9 + $0x150] sm:$0xff]  }
  0xe9   : > { %1336 = vmatpush1.bf16.msra.mxu0 %v3055_v2  ;;  %1377 = vmatpush1.bf16.msra.mxu1 %v3057_v3  ;;  %v3513_v2 = vld [vmem:[#allocation9 + $0x1d0] sm:$0xff]  }
  0xea   : > { %1337 = vmatprep.subr.bf16.mxu0 %v3072_v4  ;;  %1378 = vmatprep.subr.bf16.mxu1 %v3074_v5  ;;  %v3514_v3 = vld [vmem:[#allocation9 + $0x110] sm:$0xff]   ;;  %v3516_v5 = vld [vmem:[#allocation9 + $0x158] sm:$0xff]  }
  0xeb   : > { %v3515_v4 = vld [vmem:[#allocation9 + $0x190] sm:$0xff]  }
  0xed   : > { %1338 = vmatpush1.bf16.msra.mxu0 %v3071_v6  ;;  %1379 = vmatpush1.bf16.msra.mxu1 %v3073_v7  ;;  %v3517_v6 = vld [vmem:[#allocation9 + $0x1d8] sm:$0xff]  }
  0xee   : > { %3209 = vmatprep.subr.bf16.mxu0 %v3472_v8  ;;  %3231 = vmatprep.subr.bf16.mxu1 %v3473_v9  ;;  %v3518_v7 = vld [vmem:[#allocation9 + $0x118] sm:$0xff]   ;;  %v3520_v9 = vld [vmem:[#allocation9 + $0x160] sm:$0xff]  }
  0xef   : > { %v3519_v8 = vld [vmem:[#allocation9 + $0x198] sm:$0xff]  }
  0xf0   : > { %1356 = vmatmul.mubr.bf16.vlgmr.msra.gmra.mrb[12].mxu0 %v3602_v15  ;;  %1397 = vmatmul.mubr.bf16.vlgmr.msra.gmra.mrb[12].mxu1 %v3602_v15  ;;  %v3525_v15 = vld [vmem:[#allocation9 + $0x1e8] sm:$0xff]  }
  0xf1   : > { %3210 = vmatpush3.bf16.msra.mxu0 %v3474_v10  ;;  %3232 = vmatpush3.bf16.msra.mxu1 %v3475_v11  ;;  %v3521_v10 = vld [vmem:[#allocation9 + $0x1e0] sm:$0xff]  }
  0xf2   : > { %3211 = vmatprep.subr.bf16.mxu0 %v3476_v12  ;;  %3233 = vmatprep.subr.bf16.mxu1 %v3477_v13  ;;  %v3522_v11 = vld [vmem:[#allocation9 + $0x120] sm:$0xff]   ;;  %v3524_v13 = vld [vmem:[#allocation9 + $0x168] sm:$0xff]  }
  0xf3   : > { %v3523_v12 = vld [vmem:[#allocation9 + $0x1a0] sm:$0xff]  }
  0xf5   : > { %3212 = vmatpush3.bf16.msra.mxu0 %v3478_v16  ;;  %3234 = vmatpush3.bf16.msra.mxu1 %v3479_v17  ;;  %v3526_v16 = vld [vmem:[#allocation9 + $0x128] sm:$0xff]  }
  0xf6   : > { %3213 = vmatprep.subr.bf16.mxu0 %v3480_v18  ;;  %3235 = vmatprep.subr.bf16.mxu1 %v3481_v19  ;;  %v3527_v17 = vld [vmem:[#allocation9 + $0x1a8] sm:$0xff]   ;;  %v3528_v18 = vld [vmem:[#allocation9 + $0x170] sm:$0xff]  }
  0xf7   : > { %v3529_v19 = vld [vmem:[#allocation9 + $0x1f0] sm:$0xff]  }
  0xf9   : > { %3214 = vmatpush3.bf16.msra.mxu0 %v3482_v20  ;;  %3236 = vmatpush3.bf16.msra.mxu1 %v3483_v21  ;;  %v3530_v20 = vld [vmem:[#allocation9 + $0x130] sm:$0xff]  }
  0xfa   : > { %3215 = vmatprep.subr.bf16.mxu0 %v3484_v22  ;;  %3237 = vmatprep.subr.bf16.mxu1 %v3485_v23  ;;  %v3531_v21 = vld [vmem:[#allocation9 + $0x1b0] sm:$0xff]   ;;  %v3532_v22 = vld [vmem:[#allocation9 + $0x178] sm:$0xff]  }
  0xfb   : > { %v3533_v23 = vld [vmem:[#allocation9 + $0x1f8] sm:$0xff]  }
  0xfd   : > { %3216 = vmatpush3.bf16.msra.mxu0 %v3486_v24  ;;  %3238 = vmatpush3.bf16.msra.mxu1 %v3487_v25  ;;  %v3534_v25 = vld [vmem:[#allocation9 + $0x138] sm:$0xff]  }
  0xfe   : > { %3217 = vmatprep.subr.bf16.mxu0 %v3488_v26  ;;  %3239 = vmatprep.subr.bf16.mxu1 %v3489_v27 }
 0x101   : > { %3218 = vmatpush3.bf16.msra.mxu0 %v3490_v28  ;;  %3240 = vmatpush3.bf16.msra.mxu1 %v3491_v29  ;;  %v3535_v29 = vld [vmem:[#allocation9 + $0x1b8] sm:$0xff]  }
 0x102   : > { %3219 = vmatprep.subr.bf16.mxu0 %v3492_v30  ;;  %3241 = vmatprep.subr.bf16.mxu1 %v3493_v31  ;;  %v3536_v30 = vld [vmem:[#allocation9 + $0x240] sm:$0xff]  }
 0x105   : > { %3220 = vmatpush3.bf16.msra.mxu0 %v3494_v32  ;;  %3242 = vmatpush3.bf16.msra.mxu1 %v3495_v33 }
 0x106   : > { %3221 = vmatprep.subr.bf16.mxu0 %v3496_v34  ;;  %3243 = vmatprep.subr.bf16.mxu1 %v3497_v35  ;;  %v3537_v35 = vld [vmem:[#allocation9 + $0x2c0] sm:$0xff]  }
 0x109   : > { %3222 = vmatpush3.bf16.msra.mxu0 %v3498_v36  ;;  %3244 = vmatpush3.bf16.msra.mxu1 %v3499_v14 }
 0x10a   : > { %3223 = vmatprep.subr.bf16.mxu0 %v3500_v37  ;;  %3245 = vmatprep.subr.bf16.mxu1 %v3501_v38 }
 0x10d   : > { %3224 = vmatpush3.bf16.msra.mxu0 %v3502_v39  ;;  %3246 = vmatpush3.bf16.msra.mxu1 %v3503_v40 }
 0x10e   : > { %3253 = vmatprep.subr.bf16.mxu0 %v3504_v41  ;;  %3275 = vmatprep.subr.bf16.mxu1 %v3505_v42  ;;  %v3538_v42 = vld [vmem:[#allocation9 + $0x200] sm:$0xff]  }
 0x163   : > { %v1111_v43 = vpop.f32.mrb[0].mxu0  ;;  %v1152_v45 = vpop.f32.mrb[0].mxu1 }
 0x164   : > { %v1405_v44 = vmax.f32 %v1111_v43, 0.0  ;;  %v1113_v0 = vpop.f32.mrb[1].mxu0  ;;  %v1407_v46 = vmax.f32 %v1152_v45, 0.0  ;;  %v1154_v48 = vpop.f32.mrb[1].mxu1  ;;  %v3540_v45 = vld [vmem:[#allocation9 + $0x248] sm:$0xff]  }
 0x165   : > { %v1406_v47 = vmax.f32 %v1113_v0, 0.0  ;;  %v1115_v49 = vpop.f32.mrb[2].mxu0  ;;  %v1408_v51 = vmax.f32 %v1154_v48, 0.0  ;;  %v1156_v52 = vpop.f32.mrb[2].mxu1  ;;  %v3541_v0 = vld [vmem:[#allocation9 + $0x2c8] sm:$0xff]   ;;  %v3544_v48 = vld [vmem:[#allocation9 + $0x250] sm:$0xff]  }
 0x166   : > { %v1421_v50 = vpack.c.bf16 %v1405_v44, %v1405_v44  ;;  %v1116_v53 = vpop.f32.mrb[3].mxu0  ;;  %v1423_v54 = vpack.c.bf16 %v1407_v46, %v1407_v46  ;;  %v1157_v56 = vpop.f32.mrb[3].mxu1  ;;  %v3539_v44 = vld [vmem:[#allocation9 + $0x280] sm:$0xff]   ;;  %v3542_v46 = vld [vmem:[#allocation9 + $0x208] sm:$0xff]   ;;  %v3545_v49 = vld [vmem:[#allocation9 + $0x2d0] sm:$0xff]  }
 0x167   : > { %v1422_v55 = vpack.c.bf16 %v1406_v47, %v1406_v47  ;;  %v1424_v58 = vpack.c.bf16 %v1408_v51, %v1408_v51  ;;  %v3543_v47 = vld [vmem:[#allocation9 + $0x288] sm:$0xff]   ;;  %v3547_v51 = vld [vmem:[#allocation9 + $0x290] sm:$0xff]   ;;  %v3548_v52 = vld [vmem:[#allocation9 + $0x258] sm:$0xff]  }
 0x168   : > { %v3549_v53 = vld [vmem:[#allocation9 + $0x2d8] sm:$0xff]   ;;  %v3552_v56 = vld [vmem:[#allocation9 + $0x260] sm:$0xff]  }
 0x169   : > { %2494 = vmatprep.mubr.bf16.mxu0 %v1422_v55  ;;  %2534 = vmatprep.mubr.bf16.mxu1 %v1424_v58  ;;  %v3551_v55 = vld [vmem:[#allocation9 + $0x298] sm:$0xff]   ;;  %v3554_v58 = vld [vmem:[#allocation9 + $0x220] sm:$0xff]  }
 0x16a   : > { %2495 = vmatmul.mubr.bf16.vlgmr.msra.gmra.mrb[16].mxu0 %v1421_v50  ;;  %2535 = vmatmul.mubr.bf16.vlgmr.msra.gmra.mrb[16].mxu1 %v1423_v54  ;;  %v3546_v50 = vld [vmem:[#allocation9 + $0x210] sm:$0xff]   ;;  %v3550_v54 = vld [vmem:[#allocation9 + $0x218] sm:$0xff]  }
 0x16b   : > { %3254 = vmatpush3.bf16.msra.mxu0 %v3506_v57  ;;  %3276 = vmatpush3.bf16.msra.mxu1 %v3507_v59  ;;  %v3553_v57 = vld [vmem:[#allocation9 + $0x2e0] sm:$0xff]  }
 0x16c   : > { %3255 = vmatprep.subr.bf16.mxu0 %v3508_v60  ;;  %3277 = vmatprep.subr.bf16.mxu1 %v3509_v61  ;;  %v3555_v59 = vld [vmem:[#allocation9 + $0x2a0] sm:$0xff]   ;;  %v3556_v60 = vld [vmem:[#allocation9 + $0x268] sm:$0xff]  }
 0x16d   : > { %v3557_v61 = vld [vmem:[#allocation9 + $0x2e8] sm:$0xff]  }
 0x16f   : > { %3256 = vmatpush3.bf16.msra.mxu0 %v3510_v62  ;;  %3278 = vmatpush3.bf16.msra.mxu1 %v3511_v63  ;;  %v3558_v62 = vld [vmem:[#allocation9 + $0x228] sm:$0xff]  }
 0x170   : > { %3257 = vmatprep.subr.bf16.mxu0 %v3512_v1  ;;  %3279 = vmatprep.subr.bf16.mxu1 %v3513_v2  ;;  %v3559_v63 = vld [vmem:[#allocation9 + $0x2a8] sm:$0xff]   ;;  %v3560_v1 = vld [vmem:[#allocation9 + $0x270] sm:$0xff]  }
 0x171   : > { %v3561_v2 = vld [vmem:[#allocation9 + $0x2f0] sm:$0xff]  }
 0x173   : > { %3258 = vmatpush3.bf16.msra.mxu0 %v3514_v3  ;;  %3280 = vmatpush3.bf16.msra.mxu1 %v3515_v4  ;;  %v3562_v3 = vld [vmem:[#allocation9 + $0x230] sm:$0xff]  }
 0x174   : > { %3259 = vmatprep.subr.bf16.mxu0 %v3516_v5  ;;  %3281 = vmatprep.subr.bf16.mxu1 %v3517_v6  ;;  %v3563_v4 = vld [vmem:[#allocation9 + $0x2b0] sm:$0xff]   ;;  %v3564_v5 = vld [vmem:[#allocation9 + $0x278] sm:$0xff]  }
 0x175   : > { %v3565_v6 = vld [vmem:[#allocation9 + $0x2f8] sm:$0xff]  }
 0x177   : > { %3260 = vmatpush3.bf16.msra.mxu0 %v3518_v7  ;;  %3282 = vmatpush3.bf16.msra.mxu1 %v3519_v8  ;;  %v3566_v8 = vld [vmem:[#allocation9 + $0x238] sm:$0xff]  }
 0x178   : > { %3261 = vmatprep.subr.bf16.mxu0 %v3520_v9  ;;  %3283 = vmatprep.subr.bf16.mxu1 %v3521_v10 }
 0x17b   : > { %3262 = vmatpush3.bf16.msra.mxu0 %v3522_v11  ;;  %3284 = vmatpush3.bf16.msra.mxu1 %v3523_v12  ;;  %v3567_v12 = vld [vmem:[#allocation9 + $0x2b8] sm:$0xff]  }
 0x17c   : > { %3263 = vmatprep.subr.bf16.mxu0 %v3524_v13  ;;  %3285 = vmatprep.subr.bf16.mxu1 %v3525_v15  ;;  %v3568_v13 = vld [vmem:[#allocation9 + $0x340] sm:$0xff]  }
 0x17f   : > { %3264 = vmatpush3.bf16.msra.mxu0 %v3526_v16  ;;  %3286 = vmatpush3.bf16.msra.mxu1 %v3527_v17 }
 0x180   : > { %3265 = vmatprep.subr.bf16.mxu0 %v3528_v18  ;;  %3287 = vmatprep.subr.bf16.mxu1 %v3529_v19  ;;  %v3569_v19 = vld [vmem:[#allocation9 + $0x3c0] sm:$0xff]  }
 0x183   : > { %v1193_v24 = vpop.f32.mrb[4].mxu0  ;;  %3266 = vmatpush3.bf16.msra.mxu0 %v3530_v20  ;;  %v1234_v27 = vpop.f32.mrb[4].mxu1  ;;  %3288 = vmatpush3.bf16.msra.mxu1 %v3531_v21 }
 0x184   : > { %v1409_v26 = vmax.f32 %v1193_v24, 0.0  ;;  %v1195_v28 = vpop.f32.mrb[5].mxu0  ;;  %3267 = vmatprep.subr.bf16.mxu0 %v3532_v22  ;;  %v1411_v31 = vmax.f32 %v1234_v27, 0.0  ;;  %v1236_v33 = vpop.f32.mrb[5].mxu1  ;;  %3289 = vmatprep.subr.bf16.mxu1 %v3533_v23  ;;  %v3570_v27 = vld [vmem:[#allocation9 + $0x300] sm:$0xff]  }
 0x185   : > { %v1410_v32 = vmax.f32 %v1195_v28, 0.0  ;;  %v1197_v34 = vpop.f32.mrb[6].mxu0  ;;  %v1412_v14 = vmax.f32 %v1236_v33, 0.0  ;;  %v1238_v37 = vpop.f32.mrb[6].mxu1  ;;  %v3575_v33 = vld [vmem:[#allocation9 + $0x388] sm:$0xff]  }
 0x186   : > { %v1425_v36 = vpack.c.bf16 %v1409_v26, %v1409_v26  ;;  %v1198_v38 = vpop.f32.mrb[7].mxu0  ;;  %v1427_v39 = vpack.c.bf16 %v1411_v31, %v1411_v31  ;;  %v1239_v41 = vpop.f32.mrb[7].mxu1  ;;  %v3573_v31 = vld [vmem:[#allocation9 + $0x3c8] sm:$0xff]   ;;  %v3576_v34 = vld [vmem:[#allocation9 + $0x350] sm:$0xff]   ;;  %v3580_v37 = vld [vmem:[#allocation9 + $0x358] sm:$0xff]  }
 0x187   : > { %v1426_v40 = vpack.c.bf16 %v1410_v32, %v1410_v32  ;;  %3268 = vmatpush3.bf16.msra.mxu0 %v3534_v25  ;;  %v1428_v43 = vpack.c.bf16 %v1412_v14, %v1412_v14  ;;  %3290 = vmatpush3.bf16.msra.mxu1 %v3535_v29  ;;  %v3571_v29 = vld [vmem:[#allocation9 + $0x380] sm:$0xff]   ;;  %v3574_v32 = vld [vmem:[#allocation9 + $0x308] sm:$0xff]   ;;  %v3579_v14 = vld [vmem:[#allocation9 + $0x390] sm:$0xff]  }
 0x188   : > { %3297 = vmatprep.subr.bf16.mxu0 %v3536_v30  ;;  %3319 = vmatprep.subr.bf16.mxu1 %v3537_v35  ;;  %v3572_v30 = vld [vmem:[#allocation9 + $0x348] sm:$0xff]   ;;  %v3577_v35 = vld [vmem:[#allocation9 + $0x3d0] sm:$0xff]   ;;  %v3581_v38 = vld [vmem:[#allocation9 + $0x3d8] sm:$0xff]  }
 0x189   : > { %2574 = vmatprep.mubr.bf16.mxu0 %v1426_v40  ;;  %2614 = vmatprep.mubr.bf16.mxu1 %v1428_v43  ;;  %v3583_v40 = vld [vmem:[#allocation9 + $0x398] sm:$0xff]   ;;  %v3584_v41 = vld [vmem:[#allocation9 + $0x360] sm:$0xff]  }
 0x18a   : > { %2575 = vmatmul.mubr.bf16.vlgmr.msra.gmra.mrb[20].mxu0 %v1425_v36  ;;  %2615 = vmatmul.mubr.bf16.vlgmr.msra.gmra.mrb[20].mxu1 %v1427_v39  ;;  %v3578_v36 = vld [vmem:[#allocation9 + $0x310] sm:$0xff]   ;;  %v3582_v39 = vld [vmem:[#allocation9 + $0x318] sm:$0xff]   ;;  %v3586_v43 = vld [vmem:[#allocation9 + $0x320] sm:$0xff]  }
 0x18b   : > { %3298 = vmatpush3.bf16.msra.mxu0 %v3538_v42  ;;  %3320 = vmatpush3.bf16.msra.mxu1 %v3539_v44  ;;  %v3585_v42 = vld [vmem:[#allocation9 + $0x3e0] sm:$0xff]  }
 0x18c   : > { %3299 = vmatprep.subr.bf16.mxu0 %v3540_v45  ;;  %3321 = vmatprep.subr.bf16.mxu1 %v3541_v0  ;;  %v3587_v44 = vld [vmem:[#allocation9 + $0x3a0] sm:$0xff]   ;;  %v3588_v45 = vld [vmem:[#allocation9 + $0x368] sm:$0xff]  }
 0x18d   : > { %v3589_v0 = vld [vmem:[#allocation9 + $0x3e8] sm:$0xff]  }
 0x18f   : > { %3300 = vmatpush3.bf16.msra.mxu0 %v3542_v46  ;;  %3322 = vmatpush3.bf16.msra.mxu1 %v3543_v47  ;;  %v3590_v46 = vld [vmem:[#allocation9 + $0x328] sm:$0xff]  }
 0x190   : > { %3301 = vmatprep.subr.bf16.mxu0 %v3544_v48  ;;  %3323 = vmatprep.subr.bf16.mxu1 %v3545_v49  ;;  %v3591_v47 = vld [vmem:[#allocation9 + $0x3a8] sm:$0xff]   ;;  %v3592_v48 = vld [vmem:[#allocation9 + $0x370] sm:$0xff]  }
 0x191   : > { %v3593_v49 = vld [vmem:[#allocation9 + $0x3f0] sm:$0xff]  }
 0x193   : > { %3302 = vmatpush3.bf16.msra.mxu0 %v3546_v50  ;;  %3324 = vmatpush3.bf16.msra.mxu1 %v3547_v51  ;;  %v3594_v50 = vld [vmem:[#allocation9 + $0x330] sm:$0xff]  }
 0x194   : > { %3303 = vmatprep.subr.bf16.mxu0 %v3548_v52  ;;  %3325 = vmatprep.subr.bf16.mxu1 %v3549_v53  ;;  %v3595_v51 = vld [vmem:[#allocation9 + $0x3b0] sm:$0xff]   ;;  %v3596_v52 = vld [vmem:[#allocation9 + $0x378] sm:$0xff]  }
 0x195   : > { %v3597_v53 = vld [vmem:[#allocation9 + $0x3f8] sm:$0xff]  }
 0x197   : > { %3304 = vmatpush3.bf16.msra.mxu0 %v3550_v54  ;;  %3326 = vmatpush3.bf16.msra.mxu1 %v3551_v55  ;;  %v3598_v55 = vld [vmem:[#allocation9 + $0x338] sm:$0xff]  }
 0x198   : > { %3305 = vmatprep.subr.bf16.mxu0 %v3552_v56  ;;  %3327 = vmatprep.subr.bf16.mxu1 %v3553_v57 }
 0x19b   : > { %3306 = vmatpush3.bf16.msra.mxu0 %v3554_v58  ;;  %3328 = vmatpush3.bf16.msra.mxu1 %v3555_v59  ;;  %v3599_v59 = vld [vmem:[#allocation9 + $0x3b8] sm:$0xff]  }
 0x19c   : > { %3307 = vmatprep.subr.bf16.mxu0 %v3556_v60  ;;  %3329 = vmatprep.subr.bf16.mxu1 %v3557_v61 }
 0x19f   : > { %3308 = vmatpush3.bf16.msra.mxu0 %v3558_v62  ;;  %3330 = vmatpush3.bf16.msra.mxu1 %v3559_v63 }
 0x1a0   : > { %3309 = vmatprep.subr.bf16.mxu0 %v3560_v1  ;;  %3331 = vmatprep.subr.bf16.mxu1 %v3561_v2 }
 0x1a3   : > { %v1275_v7 = vpop.f32.mrb[8].mxu0  ;;  %3310 = vmatpush3.bf16.msra.mxu0 %v3562_v3  ;;  %v1316_v10 = vpop.f32.mrb[8].mxu1  ;;  %3332 = vmatpush3.bf16.msra.mxu1 %v3563_v4 }
 0x1a4   : > { %v1413_v9 = vmax.f32 %v1275_v7, 0.0  ;;  %v1277_v11 = vpop.f32.mrb[9].mxu0  ;;  %3311 = vmatprep.subr.bf16.mxu0 %v3564_v5  ;;  %v1415_v15 = vmax.f32 %v1316_v10, 0.0  ;;  %v1318_v17 = vpop.f32.mrb[9].mxu1  ;;  %3333 = vmatprep.subr.bf16.mxu1 %v3565_v6 }
 0x1a5   : > { %v1414_v16 = vmax.f32 %v1277_v11, 0.0  ;;  %v1279_v18 = vpop.f32.mrb[10].mxu0  ;;  %v1416_v21 = vmax.f32 %v1318_v17, 0.0  ;;  %v1320_v22 = vpop.f32.mrb[10].mxu1 }
 0x1a6   : > { %v1429_v20 = vpack.c.bf16 %v1413_v9, %v1413_v9  ;;  %v1280_v23 = vpop.f32.mrb[11].mxu0  ;;  %v1431_v24 = vpack.c.bf16 %v1415_v15, %v1415_v15  ;;  %v1321_v26 = vpop.f32.mrb[11].mxu1 }
 0x1a7   : > { %v1430_v25 = vpack.c.bf16 %v1414_v16, %v1414_v16  ;;  %3312 = vmatpush3.bf16.msra.mxu0 %v3566_v8  ;;  %v1432_v28 = vpack.c.bf16 %v1416_v21, %v1416_v21  ;;  %3334 = vmatpush3.bf16.msra.mxu1 %v3567_v12 }
 0x1a8   : > { %3341 = vmatprep.subr.bf16.mxu0 %v3568_v13  ;;  %3363 = vmatprep.subr.bf16.mxu1 %v3569_v19 }
 0x1a9   : > { %2654 = vmatprep.mubr.bf16.mxu0 %v1430_v25  ;;  %2694 = vmatprep.mubr.bf16.mxu1 %v1432_v28 }
 0x1aa   : > { %2655 = vmatmul.mubr.bf16.vlgmr.msra.gmra.mrb[24].mxu0 %v1429_v20  ;;  %2695 = vmatmul.mubr.bf16.vlgmr.msra.gmra.mrb[24].mxu1 %v1431_v24 }
 0x1ab   : > { %3342 = vmatpush3.bf16.msra.mxu0 %v3570_v27  ;;  %3364 = vmatpush3.bf16.msra.mxu1 %v3571_v29 }
 0x1ac   : > { %3343 = vmatprep.subr.bf16.mxu0 %v3572_v30  ;;  %3365 = vmatprep.subr.bf16.mxu1 %v3573_v31 }
 0x1af   : > { %3344 = vmatpush3.bf16.msra.mxu0 %v3574_v32  ;;  %3366 = vmatpush3.bf16.msra.mxu1 %v3575_v33 }
 0x1b0   : > { %3345 = vmatprep.subr.bf16.mxu0 %v3576_v34  ;;  %3367 = vmatprep.subr.bf16.mxu1 %v3577_v35 }
 0x1b3   : > { %3346 = vmatpush3.bf16.msra.mxu0 %v3578_v36  ;;  %3368 = vmatpush3.bf16.msra.mxu1 %v3579_v14 }
 0x1b4   : > { %3347 = vmatprep.subr.bf16.mxu0 %v3580_v37  ;;  %3369 = vmatprep.subr.bf16.mxu1 %v3581_v38 }
 0x1b7   : > { %3348 = vmatpush3.bf16.msra.mxu0 %v3582_v39  ;;  %3370 = vmatpush3.bf16.msra.mxu1 %v3583_v40 }
 0x1b8   : > { %3349 = vmatprep.subr.bf16.mxu0 %v3584_v41  ;;  %3371 = vmatprep.subr.bf16.mxu1 %v3585_v42 }
 0x1bb   : > { %3350 = vmatpush3.bf16.msra.mxu0 %v3586_v43  ;;  %3372 = vmatpush3.bf16.msra.mxu1 %v3587_v44 }
 0x1bc   : > { %3351 = vmatprep.subr.bf16.mxu0 %v3588_v45  ;;  %3373 = vmatprep.subr.bf16.mxu1 %v3589_v0 }
 0x1bf   : > { %3352 = vmatpush3.bf16.msra.mxu0 %v3590_v46  ;;  %3374 = vmatpush3.bf16.msra.mxu1 %v3591_v47 }
 0x1c0   : > { %3353 = vmatprep.subr.bf16.mxu0 %v3592_v48  ;;  %3375 = vmatprep.subr.bf16.mxu1 %v3593_v49 }
 0x1c3   : > { %v1357_v54 = vpop.f32.mrb[12].mxu0  ;;  %3354 = vmatpush3.bf16.msra.mxu0 %v3594_v50  ;;  %v1398_v57 = vpop.f32.mrb[12].mxu1  ;;  %3376 = vmatpush3.bf16.msra.mxu1 %v3595_v51 }
 0x1c4   : > { %v1417_v56 = vmax.f32 %v1357_v54, 0.0  ;;  %v1359_v58 = vpop.f32.mrb[13].mxu0  ;;  %3355 = vmatprep.subr.bf16.mxu0 %v3596_v52  ;;  %v1419_v60 = vmax.f32 %v1398_v57, 0.0  ;;  %v1400_v62 = vpop.f32.mrb[13].mxu1  ;;  %3377 = vmatprep.subr.bf16.mxu1 %v3597_v53 }
 0x1c5   : > { %v1418_v61 = vmax.f32 %v1359_v58, 0.0  ;;  %v1361_v63 = vpop.f32.mrb[14].mxu0  ;;  %v1420_v1 = vmax.f32 %v1400_v62, 0.0  ;;  %v1402_v2 = vpop.f32.mrb[14].mxu1 }
 0x1c6   : > { %v1362_v3 = vpop.f32.mrb[15].mxu0  ;;  %v1435_v4 = vpack.c.bf16 %v1419_v60, %v1419_v60  ;;  %v1403_v6 = vpop.f32.mrb[15].mxu1  ;;  %v1433_v7 = vpack.c.bf16 %v1417_v56, %v1417_v56 }
 0x1c7   : > { %v1434_v5 = vpack.c.bf16 %v1418_v61, %v1418_v61  ;;  %3356 = vmatpush3.bf16.msra.mxu0 %v3598_v55  ;;  %v1436_v8 = vpack.c.bf16 %v1420_v1, %v1420_v1  ;;  %3378 = vmatpush3.bf16.msra.mxu1 %v3599_v59  ;;  %v3603_v55 = vld [vmem:[%s4007_s24] sm:$0xff]  ;;  %s3696_s24 = scalar_lea.vmem %s3695_s6, 256 }
 0x1c8   : > { %p3698_p7 = scmp.lt.s32.totalorder %s3696_s24, %s3690_s17 }
 0x1c9   : > { %2734 = vmatprep.mubr.bf16.mxu0 %v1434_v5  ;;  %2774 = vmatprep.mubr.bf16.mxu1 %v1436_v8  ;;  %v3203_v5 = vld [vmem:[%s4099_s3] ss:$0 sm:$0xff] }
 0x1ca   : > { %2735 = vmatmul.mubr.bf16.vlgmr.msra.gmra.mrb[28].mxu0 %v1433_v7  ;;  %2775 = vmatmul.mubr.bf16.vlgmr.msra.gmra.mrb[28].mxu1 %v1435_v4  ;;  %v3204_v7 = vld [vmem:[%s4100_s4] ss:$0 sm:$0xff]  ;;  %p3699_p9 = por %p3698_p7, %p3697_p5 }
 0x1cc   : > { %p3700_p11 = pnand %p3699_p9, %p3693_p10 }
 0x23d   : > { %v3225_v9 = vpop.f32.mrb[16].mxu0  ;;  %v3247_v10 = vpop.f32.mrb[16].mxu1 }
 0x23e   : > { %v3226_v11 = vpop.f32.mrb[17].mxu0  ;;  %v3248_v13 = vpop.f32.mrb[17].mxu1 }
 0x23f   : > { %v3227_v12 = vadd.f32 %v3226_v11, %v3225_v9  ;;  %v3228_v15 = vpop.f32.mrb[18].mxu0  ;;  %v3249_v16 = vadd.f32 %v3248_v13, %v3247_v10  ;;  %v3250_v17 = vpop.f32.mrb[18].mxu1 }
 0x240   : > { %v3229_v18 = vpop.f32.mrb[19].mxu0  ;;  %v3251_v19 = vpop.f32.mrb[19].mxu1 }
 0x241   : > { %v2537_v20 = vadd.f32 %v3249_v16, %v3227_v12 }
 0x25d   : > { %v3269_v21 = vpop.f32.mrb[20].mxu0  ;;  %v3291_v22 = vpop.f32.mrb[20].mxu1 }
 0x25e   : > { %v3270_v23 = vpop.f32.mrb[21].mxu0  ;;  %v3292_v25 = vpop.f32.mrb[21].mxu1 }
 0x25f   : > { %v3271_v24 = vadd.f32 %v3270_v23, %v3269_v21  ;;  %v3272_v26 = vpop.f32.mrb[22].mxu0  ;;  %v3293_v27 = vadd.f32 %v3292_v25, %v3291_v22  ;;  %v3294_v28 = vpop.f32.mrb[22].mxu1 }
 0x260   : > { %v3273_v29 = vpop.f32.mrb[23].mxu0  ;;  %v3295_v31 = vpop.f32.mrb[23].mxu1 }
 0x261   : > { %v2577_v30 = vadd.f32 %v3271_v24, %v2537_v20 }
 0x263   : > { %v2617_v32 = vadd.f32 %v3293_v27, %v2577_v30 }
 0x27d   : > { %v3313_v33 = vpop.f32.mrb[24].mxu0  ;;  %v3335_v34 = vpop.f32.mrb[24].mxu1 }
 0x27e   : > { %v3314_v35 = vpop.f32.mrb[25].mxu0  ;;  %v3336_v14 = vpop.f32.mrb[25].mxu1 }
 0x27f   : > { %v3315_v36 = vadd.f32 %v3314_v35, %v3313_v33  ;;  %v3316_v37 = vpop.f32.mrb[26].mxu0  ;;  %v3337_v38 = vadd.f32 %v3336_v14, %v3335_v34  ;;  %v3338_v39 = vpop.f32.mrb[26].mxu1 }
 0x280   : > { %v3317_v40 = vpop.f32.mrb[27].mxu0  ;;  %v3339_v42 = vpop.f32.mrb[27].mxu1 }
 0x281   : > { %v2657_v41 = vadd.f32 %v3315_v36, %v2617_v32 }
 0x283   : > { %v2697_v43 = vadd.f32 %v3337_v38, %v2657_v41 }
 0x29d   : > { %v3357_v44 = vpop.f32.mrb[28].mxu0  ;;  %v3379_v45 = vpop.f32.mrb[28].mxu1 }
 0x29e   : > { %v3358_v0 = vpop.f32.mrb[29].mxu0  ;;  %v3380_v47 = vpop.f32.mrb[29].mxu1 }
 0x29f   : > { %v3359_v46 = vadd.f32 %v3358_v0, %v3357_v44  ;;  %v3360_v48 = vpop.f32.mrb[30].mxu0  ;;  %v3381_v49 = vadd.f32 %v3380_v47, %v3379_v45  ;;  %v3382_v50 = vpop.f32.mrb[30].mxu1 }
 0x2a0   : > { %v3361_v51 = vpop.f32.mrb[31].mxu0  ;;  %v3383_v53 = vpop.f32.mrb[31].mxu1 }
 0x2a1   : > { %v2737_v52 = vadd.f32 %v3359_v46, %v2697_v43 }
 0x2a3   : > { %v2777_v54 = vadd.f32 %v3381_v49, %v2737_v52 }
 0x2a5   : > { %v2782_v56 = vadd.f32 %v3603_v55, %v2777_v54 }
 0x2a7   : > { %2788 = vadd.xlane.f32.xlu0 %v2782_v56  ;;  %v2790_v57 = vmul.f32 %v2782_v56, %v2782_v56 }
 0x2ab   : > { %2791 = vadd.xlane.f32.xlu0 %v2790_v57 }
 0x334   : > { %v2789_v58 = vpop.xlane.xlu0 %2788 }
 0x335   : > { %v2793_v59 = vmul.f32 0.03125, %v2789_v58 }
 0x337   : > { %v2795_v61 = vmul.f32 %v2793_v59, %v2793_v59  ;;  %v2798_v3 = vsub.f32 %v2782_v56, %v2793_v59 }
 0x338   : > { %v2792_v60 = vpop.xlane.xlu0 %2791 }
 0x339   : > { %v2794_v62 = vmul.f32 0.03125, %v2792_v60 }
 0x33b   : > { %v2796_v63 = vsub.f32 %v2794_v62, %v2795_v61 }
 0x33d   : > { %v2797_v1 = vmax.f32 %v2796_v63, 0.0 }
 0x33f   : > { %v2799_v2 = vadd.f32 1e-05, %v2797_v1 }
 0x341   : > { %3600 = vrsqrt.f32 %v2799_v2 }
 0x34b   : > { %v3601_v4 = vpop.eup %3600 }
 0x34c   : > { %v2801_v6 = vmul.f32 %v3601_v4, %v2798_v3 }
 0x34e   : > { %v2809_v8 = vmul.f32 %v3203_v5, %v2801_v6 }
 0x350   : > { %v2817_v9 = vadd.f32 %v3204_v7, %v2809_v8 }
 0x352   : > { %2818 = vst [vmem:[%s296_s9] sm:$0xff] %v2817_v9 }
 0x353   : > { %3703 = shalt.err (!%p3700_p11)
}
 0x354   : > { %s3704_s12 = scalar_lea.hbm %s4047_s15, 128  ;;  %s3708_s30 = scalar_lea.hbm %s4101_s5, 256 }
 0x355   : > { %p3705_p0 = scmp.ne.s32.totalorder %s4047_s15, %s3704_s12  ;;  %p3709_p6 = scmp.lt.u32.totalorder %s4047_s15, %s4101_s5 }
 0x356   : > { %p3710_p3 = scmp.lt.u32.totalorder %s3708_s30, %s3704_s12  ;;  %p3712_p8 = scmp.lt.u32.totalorder %s3704_s12, %s4047_s15 }
 0x357   : > { %p3706_p4 = pnand %p3705_p0, %p4116_p12 }
 0x358   : > { %p3711_p2 = por %p3710_p3, %p3709_p6 }
 0x359   : > { %p3707_p13 = pneg %p3706_p4 }
 0x35a   : > { %p3713_p1 = por %p3712_p8, %p3711_p2 }
 0x35c   : > { %p3714_p10 = pnand %p3713_p1, %p3707_p13 }
 0x35e   : > { %3717 = shalt.err (!%p3714_p10)
}
 0x35f   : > { %3395 = dma.vmem_to_hbm [thread:$0]  (%p4116_p12), %s4049_s11, 128, %s4047_s15, %s2820_s10  }
 0x360 PF: > { %s2845_s9 = sand.u32 1, %s3756_s18   ;;  %p4117_p5 = scmp.ne.s32.totalorder %s4109_s29, 0 }
 0x361   : > { %p4118_p7 = scmp.ge.s32.totalorder %s3776_s23, 2  ;;  %s2846_s14 = scalar_lea.sflag [#allocation6], %s2845_s9 }
 0x363   : > { %p3409_p9 = pnand %p4118_p7, %p4117_p5 }
 0x365   : > { %3751 = dma.done.wait (!%p3409_p9), %s2846_s14, 128  }
 0x366   : > { %3753 = vsyncadd (!%p3409_p9), %s2846_s14, 4294967168  ;;  %s22_s23 = sadd.s32 1, %s3776_s23   ;;  %s4119_s18 = smov %s3760_s19 }
 0x367   : > { %p19_p11 = scmp.ge.s32.totalorder %s22_s23, 4   ;;  %s4120_s19 = smov %s3764_s20 }
 0x368   : > { %s4121_s20 = smov %s3958_s16  ;;  %s4122_s21 = smov %s3772_s22 }
 0x369   : > { %s4123_s22 = smov %s4125_s13  ;;  %21 = sbr.rel (!%p19_p11) target bundleno = 7 (0x7), region = 103 }
 0x370   :  { %2851 = vsyncpa [#allocation5], 1 }
 0x371   :  { %2853 = vsyncpa [#allocation5 + $0x1], 1 }
 0x372   :  { %2854 = vsyncpa [#allocation8], 1 }
 0x373   :  { %2855 = vsyncpa [#allocation6], 1 }
 0x374   :  { %2857 = vsyncpa [#allocation6 + $0x1], 1 }

</bundles_post_ra>
